<compile_context>
chip_gen: v7x
topology: tpu7x:2x2x1
jax: 0.10.0
libtpu: 0.0.40
codegen_flags: <defaults>
</compile_context>

<pallas_src>
from functools import partial

import jax
import jax.numpy as jnp
from jax.experimental import pallas as pl
from jax.experimental.pallas import tpu as pltpu

D_IN, H, C = 784, 200, 10      # logical sizes (match the PyTorch module)
H_PAD, C_PAD = 256, 128        # lane-aligned padded hidden / class dims


def _round_up(n, m):
    return ((n + m - 1) // m) * m


def twonn_kernel(x_ref, w1_ref, b1_ref, w2_ref, b2_ref, w3_ref, b3_ref, o_ref):
    # x arrives as f32 (bt, 784); cast to bf16 in-kernel for the MXU.
    x = x_ref[...].astype(jnp.bfloat16)

    # fc1 + ReLU  (bf16 MXU inputs, f32 accumulate).  Padded weight columns are
    # zero, so padded hidden lanes stay exactly 0 after ReLU.
    h1 = jnp.dot(x, w1_ref[...], preferred_element_type=jnp.float32) + b1_ref[...]
    h1 = jnp.maximum(h1, 0.0).astype(jnp.bfloat16)

    # fc2 + ReLU
    h2 = jnp.dot(h1, w2_ref[...], preferred_element_type=jnp.float32) + b2_ref[...]
    h2 = jnp.maximum(h2, 0.0).astype(jnp.bfloat16)

    # fc3 -> bf16 logits.  Softmax is done in the wrapper on the (B, 10) slice
    # (removes XLU reductions / EUP exp from the kernel's critical slot).
    logits = jnp.dot(h2, w3_ref[...], preferred_element_type=jnp.float32) + b3_ref[...]
    o_ref[...] = logits.astype(o_ref.dtype)


def prepare_params(params):
    """One-time pad + bf16 cast of the weights.  Call once, reuse every forward."""
    w1, b1, w2, b2, w3, b3 = params
    w1p = jnp.zeros((D_IN, H_PAD), jnp.bfloat16).at[:, :H].set(w1.astype(jnp.bfloat16))
    b1p = jnp.zeros((1, H_PAD), jnp.float32).at[:, :H].set(jnp.reshape(b1, (1, H)))
    w2p = jnp.zeros((H_PAD, H_PAD), jnp.bfloat16).at[:H, :H].set(w2.astype(jnp.bfloat16))
    b2p = jnp.zeros((1, H_PAD), jnp.float32).at[:, :H].set(jnp.reshape(b2, (1, H)))
    w3p = jnp.zeros((H_PAD, C_PAD), jnp.bfloat16).at[:H, :C].set(w3.astype(jnp.bfloat16))
    b3p = jnp.zeros((1, C_PAD), jnp.float32).at[:, :C].set(jnp.reshape(b3, (1, C)))
    return (w1p, b1p, w2p, b2p, w3p, b3p)


@partial(jax.jit, static_argnames=("batch_tile",))
def twonn_forward(x, prepared, *, batch_tile=1024):
    """x: (B, 784) float32.  prepared: output of prepare_params().
    Returns (B, 10) float32 softmax probabilities."""
    w1p, b1p, w2p, b2p, w3p, b3p = prepared
    B, d_in = x.shape
    assert d_in == D_IN

    # Batch tile: multiple of 256 (MXU M dim), capped so the grid has >= 2 steps
    # whenever B spans more than one minimal tile (keeps both v7x TCs busy).
    b_min = _round_up(B, 256)
    bt = min(max(256, _round_up(batch_tile, 256)), b_min)
    if b_min > 256:
        bt = min(bt, _round_up(-(-b_min // 2), 256))
    b_pad = _round_up(B, bt)
    grid = (b_pad // bt,)

    # No feature-dim padding and no dtype conversion of x in the wrapper.  Only
    # a ragged batch needs a (batch-only) pad copy; padded rows are garbage-free
    # zeros and are sliced away below.
    x_in = x if b_pad == B else jnp.pad(x, ((0, b_pad - B), (0, 0)))

    in_specs = [
        pl.BlockSpec((bt, D_IN), lambda i: (i, 0)),       # x   (tiled over batch, full K)
        pl.BlockSpec((D_IN, H_PAD), lambda i: (0, 0)),    # w1  (resident across grid)
        pl.BlockSpec((1, H_PAD), lambda i: (0, 0)),       # b1
        pl.BlockSpec((H_PAD, H_PAD), lambda i: (0, 0)),   # w2
        pl.BlockSpec((1, H_PAD), lambda i: (0, 0)),       # b2
        pl.BlockSpec((H_PAD, C_PAD), lambda i: (0, 0)),   # w3
        pl.BlockSpec((1, C_PAD), lambda i: (0, 0)),       # b3
    ]
    out_spec = pl.BlockSpec((bt, C_PAD), lambda i: (i, 0))  # lane-dense bf16 logits

    logits_padded = pl.pallas_call(
        twonn_kernel,
        out_shape=jax.ShapeDtypeStruct((b_pad, C_PAD), jnp.bfloat16),
        grid_spec=pltpu.PrefetchScalarGridSpec(
            num_scalar_prefetch=0,
            grid=grid,
            in_specs=in_specs,
            out_specs=out_spec,
        ),
        compiler_params=pltpu.CompilerParams(
            dimension_semantics=("parallel",),      # shard batch steps across TCs (v7x)
            vmem_limit_bytes=32 * 1024 * 1024,      # explicit headroom (v5e default 16 MiB)
        ),
    )(x_in, w1p, b1p, w2p, b2p, w3p, b3p)

    # Exact f32 softmax on the tiny (B, 10) slice; fuses with the slice under jit.
    logits = logits_padded[:B, :C].astype(jnp.float32)
    return jax.nn.softmax(logits, axis=-1)


def init_params(key):
    """Deterministic init mirroring nn.Linear shapes (stored as (in, out))."""
    k1, k2, k3, k4, k5, k6 = jax.random.split(key, 6)

    def uniform(k, shape, fan_in):
        bound = 1.0 / jnp.sqrt(fan_in)
        return jax.random.uniform(k, shape, jnp.float32, -bound, bound)

    w1 = uniform(k1, (D_IN, H), 784.0)
    b1 = uniform(k2, (1, H), 784.0)
    w2 = uniform(k3, (H, H), 200.0)
    b2 = uniform(k4, (1, H), 200.0)
    w3 = uniform(k5, (H, C), 200.0)
    b3 = uniform(k6, (1, C), 200.0)
    return (w1, b1, w2, b2, w3, b3)


def reference_forward(x, params):
    w1, b1, w2, b2, w3, b3 = params
    h1 = jax.nn.relu(x @ w1 + b1)
    h2 = jax.nn.relu(h1 @ w2 + b2)
    return jax.nn.softmax(h2 @ w3 + b3, axis=1)


if __name__ == "__main__":
    key = jax.random.PRNGKey(0)
    kx, kx2, kp = jax.random.split(key, 3)
    params = init_params(kp)
    prepared = prepare_params(params)   # pad + cast weights ONCE

    # Small correctness check (single grid step).
    B1 = 32
    x1 = jax.random.normal(kx, (B1, D_IN), dtype=jnp.float32)
    out1 = jax.block_until_ready(twonn_forward(x1, prepared))
    ref1 = reference_forward(x1, params)
    assert out1.shape == (B1, C)
    # bf16 matmuls / bf16 logits -> loosened tolerance vs. the f32 reference.
    assert jnp.allclose(out1, ref1, atol=2e-2, rtol=2e-2)
    # Softmax is now exact f32 in the wrapper, so rows sum to 1 tightly.
    assert jnp.allclose(jnp.sum(out1, axis=1), 1.0, atol=1e-5)

    # Multi-grid-step check (ragged B -> batch pad, 3 steps of 256).
    B2 = 520
    x2 = jax.random.normal(kx2, (B2, D_IN), dtype=jnp.float32)
    out2 = jax.block_until_ready(twonn_forward(x2, prepared, batch_tile=256))
    ref2 = reference_forward(x2, params)
    assert out2.shape == (B2, C)
    assert jnp.allclose(out2, ref2, atol=2e-2, rtol=2e-2)
    assert jnp.allclose(jnp.sum(out2, axis=1), 1.0, atol=1e-5)

    print("KERNEL_OK")
</pallas_src>

<mosaic_0001>
module attributes {stable_mosaic.version = 11 : i64} {
  func.func @twonn_kernel(%arg0: i32, %arg1: memref<256x784xf32, #tpu.memory_space<vmem>>, %arg2: memref<784x256xbf16, #tpu.memory_space<vmem>>, %arg3: memref<1x256xf32, #tpu.memory_space<vmem>>, %arg4: memref<256x256xbf16, #tpu.memory_space<vmem>>, %arg5: memref<1x256xf32, #tpu.memory_space<vmem>>, %arg6: memref<256x128xbf16, #tpu.memory_space<vmem>>, %arg7: memref<1x128xf32, #tpu.memory_space<vmem>>, %arg8: memref<256x128xbf16, #tpu.memory_space<vmem>>) attributes {dimension_semantics = [#tpu.dimension_semantics<parallel>], iteration_bounds = array<i64: 1>, scalar_prefetch = 0 : i64, scratch_operands = 0 : i64, tpu.core_type = #tpu.core_type<tc>, window_params = [{transform_indices = @transform_0, window_bounds = array<i64: 256, 784>}, {pipeline_mode = #tpu.pipeline_mode<synchronous>, transform_indices = @transform_1, window_bounds = array<i64: 784, 256>}, {pipeline_mode = #tpu.pipeline_mode<synchronous>, transform_indices = @transform_2, window_bounds = array<i64: 1, 256>}, {pipeline_mode = #tpu.pipeline_mode<synchronous>, transform_indices = @transform_3, window_bounds = array<i64: 256, 256>}, {pipeline_mode = #tpu.pipeline_mode<synchronous>, transform_indices = @transform_4, window_bounds = array<i64: 1, 256>}, {pipeline_mode = #tpu.pipeline_mode<synchronous>, transform_indices = @transform_5, window_bounds = array<i64: 256, 128>}, {pipeline_mode = #tpu.pipeline_mode<synchronous>, transform_indices = @transform_6, window_bounds = array<i64: 1, 128>}, {transform_indices = @transform_7, window_bounds = array<i64: 256, 128>}]} {
    %c0 = arith.constant 0 : index
    %c0_0 = arith.constant 0 : index
    %0 = vector.load %arg1[%c0, %c0_0] : memref<256x784xf32, #tpu.memory_space<vmem>>, vector<256x784xf32>
    %1 = arith.truncf %0 : vector<256x784xf32> to vector<256x784xbf16>
    %c0_1 = arith.constant 0 : index
    %c0_2 = arith.constant 0 : index
    %2 = vector.load %arg2[%c0_1, %c0_2] : memref<784x256xbf16, #tpu.memory_space<vmem>>, vector<784x256xbf16>
    %cst = arith.constant dense<0.000000e+00> : vector<256x256xf32>
    %3 = tpu.matmul %1, %2, %cst {dimension_numbers = #tpu.dot_dimension_numbers<[1], [0], [0], [1], [0, 0, 1, 1], [], []>} : vector<256x784xbf16>, vector<784x256xbf16>, vector<256x256xf32> -> vector<256x256xf32>
    %c0_3 = arith.constant 0 : index
    %c0_4 = arith.constant 0 : index
    %4 = vector.load %arg3[%c0_3, %c0_4] : memref<1x256xf32, #tpu.memory_space<vmem>>, vector<1x256xf32>
    %5 = vector.broadcast %4 : vector<1x256xf32> to vector<256x256xf32>
    %6 = arith.addf %3, %5 : vector<256x256xf32>
    %cst_5 = arith.constant 0.000000e+00 : f32
    %7 = vector.broadcast %cst_5 : f32 to vector<256x256xf32>
    %8 = arith.maximumf %6, %7 : vector<256x256xf32>
    %9 = arith.truncf %8 : vector<256x256xf32> to vector<256x256xbf16>
    %c0_6 = arith.constant 0 : index
    %c0_7 = arith.constant 0 : index
    %10 = vector.load %arg4[%c0_6, %c0_7] : memref<256x256xbf16, #tpu.memory_space<vmem>>, vector<256x256xbf16>
    %cst_8 = arith.constant dense<0.000000e+00> : vector<256x256xf32>
    %11 = tpu.matmul %9, %10, %cst_8 {dimension_numbers = #tpu.dot_dimension_numbers<[1], [0], [0], [1], [0, 0, 1, 1], [], []>} : vector<256x256xbf16>, vector<256x256xbf16>, vector<256x256xf32> -> vector<256x256xf32>
    %c0_9 = arith.constant 0 : index
    %c0_10 = arith.constant 0 : index
    %12 = vector.load %arg5[%c0_9, %c0_10] : memref<1x256xf32, #tpu.memory_space<vmem>>, vector<1x256xf32>
    %13 = vector.broadcast %12 : vector<1x256xf32> to vector<256x256xf32>
    %14 = arith.addf %11, %13 : vector<256x256xf32>
    %cst_11 = arith.constant 0.000000e+00 : f32
    %15 = vector.broadcast %cst_11 : f32 to vector<256x256xf32>
    %16 = arith.maximumf %14, %15 : vector<256x256xf32>
    %17 = arith.truncf %16 : vector<256x256xf32> to vector<256x256xbf16>
    %c0_12 = arith.constant 0 : index
    %c0_13 = arith.constant 0 : index
    %18 = vector.load %arg6[%c0_12, %c0_13] : memref<256x128xbf16, #tpu.memory_space<vmem>>, vector<256x128xbf16>
    %cst_14 = arith.constant dense<0.000000e+00> : vector<256x128xf32>
    %19 = tpu.matmul %17, %18, %cst_14 {dimension_numbers = #tpu.dot_dimension_numbers<[1], [0], [0], [1], [0, 0, 1, 1], [], []>} : vector<256x256xbf16>, vector<256x128xbf16>, vector<256x128xf32> -> vector<256x128xf32>
    %c0_15 = arith.constant 0 : index
    %c0_16 = arith.constant 0 : index
    %20 = vector.load %arg7[%c0_15, %c0_16] : memref<1x128xf32, #tpu.memory_space<vmem>>, vector<1x128xf32>
    %21 = vector.broadcast %20 : vector<1x128xf32> to vector<256x128xf32>
    %22 = arith.addf %19, %21 : vector<256x128xf32>
    %23 = arith.truncf %22 : vector<256x128xf32> to vector<256x128xbf16>
    %c0_17 = arith.constant 0 : index
    %c0_18 = arith.constant 0 : index
    %24 = vector.load %arg8[%c0_17, %c0_18] : memref<256x128xbf16, #tpu.memory_space<vmem>>, vector<256x128xbf16>
    tpu.vector_store %arg8[%c0_17, %c0_18], %23 {strides = array<i32>} : memref<256x128xbf16, #tpu.memory_space<vmem>>, vector<256x128xbf16>,
    return
  }
  func.func @transform_0(%arg0: i32) -> (i32, i32) {
    %c0_i32 = arith.constant 0 : i32
    %c0_i32_0 = arith.constant 0 : i32
    return %arg0, %c0_i32 : i32, i32
  }
  func.func @transform_1(%arg0: i32) -> (i32, i32) {
    %c0_i32 = arith.constant 0 : i32
    %c0_i32_0 = arith.constant 0 : i32
    %c0_i32_1 = arith.constant 0 : i32
    return %c0_i32, %c0_i32_0 : i32, i32
  }
  func.func @transform_2(%arg0: i32) -> (i32, i32) {
    %c0_i32 = arith.constant 0 : i32
    %c0_i32_0 = arith.constant 0 : i32
    %c0_i32_1 = arith.constant 0 : i32
    return %c0_i32, %c0_i32_0 : i32, i32
  }
  func.func @transform_3(%arg0: i32) -> (i32, i32) {
    %c0_i32 = arith.constant 0 : i32
    %c0_i32_0 = arith.constant 0 : i32
    %c0_i32_1 = arith.constant 0 : i32
    return %c0_i32, %c0_i32_0 : i32, i32
  }
  func.func @transform_4(%arg0: i32) -> (i32, i32) {
    %c0_i32 = arith.constant 0 : i32
    %c0_i32_0 = arith.constant 0 : i32
    %c0_i32_1 = arith.constant 0 : i32
    return %c0_i32, %c0_i32_0 : i32, i32
  }
  func.func @transform_5(%arg0: i32) -> (i32, i32) {
    %c0_i32 = arith.constant 0 : i32
    %c0_i32_0 = arith.constant 0 : i32
    %c0_i32_1 = arith.constant 0 : i32
    return %c0_i32, %c0_i32_0 : i32, i32
  }
  func.func @transform_6(%arg0: i32) -> (i32, i32) {
    %c0_i32 = arith.constant 0 : i32
    %c0_i32_0 = arith.constant 0 : i32
    %c0_i32_1 = arith.constant 0 : i32
    return %c0_i32, %c0_i32_0 : i32, i32
  }
  func.func @transform_7(%arg0: i32) -> (i32, i32) {
    %c0_i32 = arith.constant 0 : i32
    %c0_i32_0 = arith.constant 0 : i32
    return %arg0, %c0_i32 : i32, i32
  }
}

</mosaic_0001>

<bundles_post_ra>
// kernel: twonn_forward.1
= control target key start
LH: loop header
LB: loop body
LE: loop exit
PB: predicated region body
PF: predicated region fallthrough
CT: control target
= control target key end

     0   :  { %vm963_vm0 = vcmask 130048   ;;  %s5349_s1 = inlined_call_operand.vmem [shape: bf16[784,256], index: 1, kind: input, shape index: {}]   ;;  %s5350_s0 = inlined_call_operand.vmem [shape: f32[256,784], index: 0, kind: input, shape index: {}]   ;;  %s5351_s3 = inlined_call_operand.vmem [shape: bf16[256,256], index: 3, kind: input, shape index: {}]   ;;  %s5352_s5 = inlined_call_operand.vmem [shape: bf16[256,128], index: 5, kind: input, shape index: {}]   ;;  %s5353_s2 = inlined_call_operand.vmem [shape: f32[1,256], index: 2, kind: input, shape index: {}]   ;;  %s5354_s4 = inlined_call_operand.vmem [shape: f32[1,256], index: 4, kind: input, shape index: {}]   ;;  %s5355_s6 = inlined_call_operand.vmem [shape: f32[1,128], index: 6, kind: input, shape index: {}]   ;;  %s5356_s7 = inlined_call_operand.vmem [shape: bf16[256,128], index: 7, kind: output, shape index: {}]  }
   0x1   :  { %v3524_v0 = vld [vmem:[%s5349_s1 + $0x104] ss:$8 sps:$4 sm:$0xff]   ;;  %v3526_v1 = vld [vmem:[%s5349_s1 + $0x100] ss:$8 sps:$4 sm:$0xff]   ;;  %v3527_v2 = vld [vmem:[%s5349_s1 + $0x114] ss:$8 sps:$4 sm:$0xff]  }
   0x2   :  { %1205 = vmatprep.subr.bf16.mxu0 %v3524_v0  ;;  %v3529_v3 = vld [vmem:[%s5349_s1 + $0x110] ss:$8 sps:$4 sm:$0xff]   ;;  %v3530_v4 = vld [vmem:[%s5349_s1 + $0x124] ss:$8 sps:$4 sm:$0xff]   ;;  %v3532_v5 = vld [vmem:[%s5349_s1 + $0x120] ss:$8 sps:$4 sm:$0xff]  }
   0x3   :  { %1206 = vmatpush1.bf16.msra.mxu0 %v3526_v1  ;;  %v3533_v6 = vld [vmem:[%s5349_s1 + $0x134] ss:$8 sps:$4 sm:$0xff]   ;;  %v3535_v7 = vld [vmem:[%s5349_s1 + $0x130] ss:$8 sps:$4 sm:$0xff]   ;;  %v3536_v8 = vld [vmem:[%s5349_s1 + $0x144] ss:$8 sps:$4 sm:$0xff]  }
   0x4   :  { %1207 = vmatprep.subr.bf16.mxu0 %v3527_v2  ;;  %v3538_v9 = vld [vmem:[%s5349_s1 + $0x140] ss:$8 sps:$4 sm:$0xff]   ;;  %v3539_v10 = vld [vmem:[%s5349_s1 + $0x154] ss:$8 sps:$4 sm:$0xff]   ;;  %v3541_v11 = vld [vmem:[%s5349_s1 + $0x150] ss:$8 sps:$4 sm:$0xff]  }
   0x5   :  { %v3542_v12 = vld [vmem:[%s5349_s1 + $0x164] ss:$8 sps:$4 sm:$0xff]   ;;  %v30_v13 = vld [vmem:[%s5350_s0 + $0x18] sm:$0xff]  ;;  %v37_v14 = vld [vmem:[%s5350_s0 + $0x50] sm:$0xff] }
   0x6   :  { %v254_v15 = vpack.c.bf16 %v37_v14, %v30_v13  ;;  %v3544_v16 = vld [vmem:[%s5349_s1 + $0x160] ss:$8 sps:$4 sm:$0xff]   ;;  %v3545_v17 = vld [vmem:[%s5349_s1 + $0x174] ss:$8 sps:$4 sm:$0xff]   ;;  %v3547_v18 = vld [vmem:[%s5349_s1 + $0x170] ss:$8 sps:$4 sm:$0xff]  }
   0x7   :  { %1208 = vmatpush1.bf16.msra.mxu0 %v3529_v3  ;;  %v3548_v19 = vld [vmem:[%s5349_s1 + $0x184] ss:$8 sps:$4 sm:$0xff]   ;;  %v3550_v20 = vld [vmem:[%s5349_s1 + $0x180] ss:$8 sps:$4 sm:$0xff]   ;;  %v3551_v21 = vld [vmem:[%s5349_s1 + $0x194] ss:$8 sps:$4 sm:$0xff]  }
   0x8   :  { %1209 = vmatprep.subr.bf16.mxu0 %v3530_v4  ;;  %1237 = vmatprep.mubr.bf16.mxu0 %v254_v15  ;;  %v3553_v22 = vld [vmem:[%s5349_s1 + $0x190] ss:$8 sps:$4 sm:$0xff]   ;;  %v3554_v23 = vld [vmem:[%s5349_s1 + $0x1a4] ss:$8 sps:$4 sm:$0xff]   ;;  %v3556_v24 = vld [vmem:[%s5349_s1 + $0x1a0] ss:$8 sps:$4 sm:$0xff]  }
   0x9   :  { %v3557_v25 = vld [vmem:[%s5349_s1 + $0x1b4] ss:$8 sps:$4 sm:$0xff]   ;;  %v3559_v26 = vld [vmem:[%s5349_s1 + $0x1b0] ss:$8 sps:$4 sm:$0xff]   ;;  %v3560_v27 = vld [vmem:[%s5349_s1 + $0x1c4] ss:$8 sps:$4 sm:$0xff]  }
   0xa   :  { %v3562_v28 = vld [vmem:[%s5349_s1 + $0x1c0] ss:$8 sps:$4 sm:$0xff]   ;;  %v3563_v29 = vld [vmem:[%s5349_s1 + $0x1d4] ss:$8 sps:$4 sm:$0xff]   ;;  %v3565_v30 = vld [vmem:[%s5349_s1 + $0x1d0] ss:$8 sps:$4 sm:$0xff]  }
   0xb   :  { %1210 = vmatpush1.bf16.msra.mxu0 %v3532_v5  ;;  %v3566_v31 = vld [vmem:[%s5349_s1 + $0x1e4] ss:$8 sps:$4 sm:$0xff]   ;;  %v3568_v32 = vld [vmem:[%s5349_s1 + $0x1e0] ss:$8 sps:$4 sm:$0xff]   ;;  %v3569_v33 = vld [vmem:[%s5349_s1 + $0x1f4] ss:$8 sps:$4 sm:$0xff]  }
   0xc   :  { %1211 = vmatprep.subr.bf16.mxu0 %v3533_v6  ;;  %v3571_v34 = vld [vmem:[%s5349_s1 + $0x1f0] ss:$8 sps:$4 sm:$0xff]   ;;  %v36_v36 = vld [vmem:[%s5350_s0 + $0x48] sm:$0xff]  ;;  %v51_v39 = vld [vmem:[%s5350_s0 + $0xc0] sm:$0xff] }
   0xd   :  { %v29_v35 = vld [vmem:[%s5350_s0 + $0x10] sm:$0xff]  ;;  %v3574_v37 = vld [vmem:[%s5349_s1 + $0x204] ss:$8 sps:$4 sm:$0xff]   ;;  %v3572_v41 = vld [vmem:[%s5349_s1 + $0x200] ss:$8 sps:$4 sm:$0xff]  }
   0xe   :  { %v44_v38 = vld [vmem:[%s5350_s0 + $0x88] sm:$0xff]  ;;  %v253_v40 = vpack.c.bf16 %v36_v36, %v29_v35  ;;  %v3577_v43 = vld [vmem:[%s5349_s1 + $0x214] ss:$8 sps:$4 sm:$0xff]   ;;  %v43_v44 = vld [vmem:[%s5350_s0 + $0x80] sm:$0xff] }
   0xf   :  { %1212 = vmatpush1.bf16.msra.mxu0 %v3535_v7  ;;  %v261_v42 = vpack.c.bf16 %v51_v39, %v44_v38  ;;  %v50_v45 = vld [vmem:[%s5350_s0 + $0xb8] sm:$0xff]  ;;  %v65_v48 = vld [vmem:[%s5350_s0 + $0x130] sm:$0xff]  ;;  %v3580_v49 = vld [vmem:[%s5349_s1 + $0x224] ss:$8 sps:$4 sm:$0xff]  }
  0x10   :  { %1213 = vmatprep.subr.bf16.mxu0 %v3536_v8  ;;  %v3575_v46 = vld [vmem:[%s5349_s1 + $0x210] ss:$8 sps:$4 sm:$0xff]   ;;  %v3578_v50 = vld [vmem:[%s5349_s1 + $0x220] ss:$8 sps:$4 sm:$0xff]   ;;  %v260_v51 = vpack.c.bf16 %v50_v45, %v43_v44  ;;  %v3583_v52 = vld [vmem:[%s5349_s1 + $0x234] ss:$8 sps:$4 sm:$0xff]  }
  0x11   :  { %v58_v47 = vld [vmem:[%s5350_s0 + $0xf8] sm:$0xff]  ;;  %v57_v54 = vld [vmem:[%s5350_s0 + $0xf0] sm:$0xff]  ;;  %v64_v55 = vld [vmem:[%s5350_s0 + $0x128] sm:$0xff] }
  0x12   :  { %v268_v53 = vpack.c.bf16 %v65_v48, %v58_v47  ;;  %v72_v56 = vld [vmem:[%s5350_s0 + $0x168] sm:$0xff]  ;;  %v79_v57 = vld [vmem:[%s5350_s0 + $0x1a0] sm:$0xff]  ;;  %v3581_v58 = vld [vmem:[%s5349_s1 + $0x230] ss:$8 sps:$4 sm:$0xff]   ;;  %v267_v61 = vpack.c.bf16 %v64_v55, %v57_v54 }
  0x13   :  { %1214 = vmatpush1.bf16.msra.mxu0 %v3538_v9  ;;  %v3586_v59 = vld [vmem:[%s5349_s1 + $0x244] ss:$8 sps:$4 sm:$0xff]   ;;  %v3584_v60 = vld [vmem:[%s5349_s1 + $0x240] ss:$8 sps:$4 sm:$0xff]   ;;  %v275_v62 = vpack.c.bf16 %v79_v57, %v72_v56  ;;  %v3589_v63 = vld [vmem:[%s5349_s1 + $0x254] ss:$8 sps:$4 sm:$0xff]  }
  0x14   :  { %1215 = vmatprep.subr.bf16.mxu0 %v3539_v10  ;;  %v71_v0 = vld [vmem:[%s5350_s0 + $0x160] sm:$0xff]  ;;  %v78_v1 = vld [vmem:[%s5350_s0 + $0x198] sm:$0xff]  ;;  %v93_v4 = vld [vmem:[%s5350_s0 + $0x210] sm:$0xff] }
  0x15   :  { %v3587_v2 = vld [vmem:[%s5349_s1 + $0x250] ss:$8 sps:$4 sm:$0xff]   ;;  %v3592_v5 = vld [vmem:[%s5349_s1 + $0x264] ss:$8 sps:$4 sm:$0xff]   ;;  %v274_v6 = vpack.c.bf16 %v78_v1, %v71_v0  ;;  %v3590_v8 = vld [vmem:[%s5349_s1 + $0x260] ss:$8 sps:$4 sm:$0xff]  }
  0x16   :  { %v86_v3 = vld [vmem:[%s5350_s0 + $0x1d8] sm:$0xff]  ;;  %v85_v10 = vld [vmem:[%s5350_s0 + $0x1d0] sm:$0xff]  ;;  %v100_v13 = vld [vmem:[%s5350_s0 + $0x248] sm:$0xff] }
  0x17   :  { %1216 = vmatpush1.bf16.msra.mxu0 %v3541_v11  ;;  %v282_v7 = vpack.c.bf16 %v93_v4, %v86_v3  ;;  %v3595_v9 = vld [vmem:[%s5349_s1 + $0x274] ss:$8 sps:$4 sm:$0xff]   ;;  %v92_v11 = vld [vmem:[%s5350_s0 + $0x208] sm:$0xff]  ;;  %v107_v14 = vld [vmem:[%s5350_s0 + $0x280] sm:$0xff] }
  0x18   :  { %1217 = vmatprep.subr.bf16.mxu0 %v3542_v12  ;;  %v3593_v12 = vld [vmem:[%s5349_s1 + $0x270] ss:$8 sps:$4 sm:$0xff]   ;;  %v3598_v15 = vld [vmem:[%s5349_s1 + $0x284] ss:$8 sps:$4 sm:$0xff]   ;;  %v3608_v38 = vld [vmem:[%s5349_s1 + $0x2c0] ss:$8 sps:$4 sm:$0xff]  }
  0x19   :  { %v3610_v35 = vld [vmem:[%s5349_s1 + $0x2c4] ss:$8 sps:$4 sm:$0xff]   ;;  %v3613_v39 = vld [vmem:[%s5349_s1 + $0x2d4] ss:$8 sps:$4 sm:$0xff]   ;;  %v3614_v48 = vld [vmem:[%s5349_s1 + $0x2e0] ss:$8 sps:$4 sm:$0xff]  }
  0x1a   :  { %v149_v44 = vld [vmem:[%s5350_s0 + $0x3d0] sm:$0xff]  ;;  %v3616_v45 = vld [vmem:[%s5349_s1 + $0x2e4] ss:$8 sps:$4 sm:$0xff]   ;;  %v162_v1 = vld [vmem:[%s5350_s0 + $0x438] sm:$0xff] }
  0x1b   :  { %1218 = vmatpush1.bf16.msra.mxu0 %v3544_v16  ;;  %v281_v16 = vpack.c.bf16 %v92_v11, %v85_v10  ;;  %v3617_v54 = vld [vmem:[%s5349_s1 + $0x2f0] ss:$8 sps:$4 sm:$0xff]   ;;  %v3626_v55 = vld [vmem:[%s5349_s1 + $0x14] ss:$8 sps:$4 sm:$0xff]   ;;  %v156_v56 = vld [vmem:[%s5350_s0 + $0x408] sm:$0xff] }
  0x1c   :  { %1219 = vmatprep.subr.bf16.mxu0 %v3545_v17  ;;  %v289_v17 = vpack.c.bf16 %v107_v14, %v100_v13  ;;  %v163_v57 = vld [vmem:[%s5350_s0 + $0x440] sm:$0xff]  ;;  %v170_v3 = vld [vmem:[%s5350_s0 + $0x478] sm:$0xff]  ;;  %v177_v4 = vld [vmem:[%s5350_s0 + $0x4b0] sm:$0xff] }
  0x1d   :  { %v155_v0 = vld [vmem:[%s5350_s0 + $0x400] sm:$0xff]  ;;  %v169_v10 = vld [vmem:[%s5350_s0 + $0x470] sm:$0xff]  ;;  %v176_v11 = vld [vmem:[%s5350_s0 + $0x4a8] sm:$0xff] }
  0x1e   :  { %v184_v13 = vld [vmem:[%s5350_s0 + $0x4e8] sm:$0xff]  ;;  %v191_v14 = vld [vmem:[%s5350_s0 + $0x520] sm:$0xff] }
  0x1f   :  { %1220 = vmatpush1.bf16.msra.mxu0 %v3547_v18  ;;  %v3596_v18 = vld [vmem:[%s5349_s1 + $0x280] ss:$8 sps:$4 sm:$0xff]  }
  0x20   :  { %1221 = vmatprep.subr.bf16.mxu0 %v3548_v19  ;;  %v3601_v19 = vld [vmem:[%s5349_s1 + $0x294] ss:$8 sps:$4 sm:$0xff]  }
  0x23   :  { %1222 = vmatpush1.bf16.msra.mxu0 %v3550_v20  ;;  %v99_v20 = vld [vmem:[%s5350_s0 + $0x240] sm:$0xff] }
  0x24   :  { %1223 = vmatprep.subr.bf16.mxu0 %v3551_v21  ;;  %v106_v21 = vld [vmem:[%s5350_s0 + $0x278] sm:$0xff] }
  0x27   :  { %1224 = vmatpush1.bf16.msra.mxu0 %v3553_v22  ;;  %v3599_v22 = vld [vmem:[%s5349_s1 + $0x290] ss:$8 sps:$4 sm:$0xff]  }
  0x28   :  { %1225 = vmatprep.subr.bf16.mxu0 %v3554_v23  ;;  %v114_v23 = vld [vmem:[%s5350_s0 + $0x2b8] sm:$0xff] }
  0x2b   :  { %1226 = vmatpush1.bf16.msra.mxu0 %v3556_v24  ;;  %v121_v24 = vld [vmem:[%s5350_s0 + $0x2f0] sm:$0xff] }
  0x2c   :  { %1227 = vmatprep.subr.bf16.mxu0 %v3557_v25  ;;  %v3604_v25 = vld [vmem:[%s5349_s1 + $0x2a4] ss:$8 sps:$4 sm:$0xff]  }
  0x2f   :  { %1228 = vmatpush1.bf16.msra.mxu0 %v3559_v26  ;;  %v288_v26 = vpack.c.bf16 %v106_v21, %v99_v20  ;;  %v183_v20 = vld [vmem:[%s5350_s0 + $0x4e0] sm:$0xff]  ;;  %v190_v21 = vld [vmem:[%s5350_s0 + $0x518] sm:$0xff] }
  0x30   :  { %1229 = vmatprep.subr.bf16.mxu0 %v3560_v27  ;;  %v296_v27 = vpack.c.bf16 %v121_v24, %v114_v23  ;;  %v198_v23 = vld [vmem:[%s5350_s0 + $0x558] sm:$0xff]  ;;  %v205_v24 = vld [vmem:[%s5350_s0 + $0x590] sm:$0xff] }
  0x33   :  { %1230 = vmatpush1.bf16.msra.mxu0 %v3562_v28  ;;  %v3602_v28 = vld [vmem:[%s5349_s1 + $0x2a0] ss:$8 sps:$4 sm:$0xff]  }
  0x34   :  { %1231 = vmatprep.subr.bf16.mxu0 %v3563_v29  ;;  %v3607_v29 = vld [vmem:[%s5349_s1 + $0x2b4] ss:$8 sps:$4 sm:$0xff]  }
  0x37   :  { %1232 = vmatpush1.bf16.msra.mxu0 %v3565_v30  ;;  %v113_v30 = vld [vmem:[%s5350_s0 + $0x2b0] sm:$0xff] }
  0x38   :  { %1233 = vmatprep.subr.bf16.mxu0 %v3566_v31  ;;  %v120_v31 = vld [vmem:[%s5350_s0 + $0x2e8] sm:$0xff] }
  0x39   :  { %v295_v36 = vpack.c.bf16 %v120_v31, %v113_v30  ;;  %v197_v30 = vld [vmem:[%s5350_s0 + $0x550] sm:$0xff]  ;;  %v204_v31 = vld [vmem:[%s5350_s0 + $0x588] sm:$0xff] }
  0x3b   :  { %1234 = vmatpush1.bf16.msra.mxu0 %v3568_v32  ;;  %v3605_v32 = vld [vmem:[%s5349_s1 + $0x2b0] ss:$8 sps:$4 sm:$0xff]  }
  0x3c   :  { %1235 = vmatprep.subr.bf16.mxu0 %v3569_v33  ;;  %v128_v33 = vld [vmem:[%s5350_s0 + $0x328] sm:$0xff] }
  0x3f   :  { %1236 = vmatpush1.bf16.msra.mxu0 %v3571_v34  ;;  %v135_v34 = vld [vmem:[%s5350_s0 + $0x360] sm:$0xff] }
  0x40   :  { %1398 = vmatprep.subr.bf16.mxu0 %v3574_v37  ;;  %v303_v37 = vpack.c.bf16 %v135_v34, %v128_v33  ;;  %v212_v33 = vld [vmem:[%s5350_s0 + $0x5c8] sm:$0xff]  ;;  %v219_v34 = vld [vmem:[%s5350_s0 + $0x600] sm:$0xff] }
  0x42   :  { %1238 = vmatmul.mubr.bf16.vlgmr.msra.gmra.mrb[0].mxu0 %v253_v40  ;;  %v127_v40 = vld [vmem:[%s5350_s0 + $0x320] sm:$0xff] }
  0x43   :  { %1399 = vmatpush1.bf16.msra.mxu0 %v3572_v41  ;;  %1247 = vmatprep.mubr.bf16.mxu0 %v261_v42  ;;  %v134_v41 = vld [vmem:[%s5350_s0 + $0x358] sm:$0xff] }
  0x44   :  { %1400 = vmatprep.subr.bf16.mxu0 %v3577_v43  ;;  %v3611_v42 = vld [vmem:[%s5349_s1 + $0x2d0] ss:$8 sps:$4 sm:$0xff]  }
  0x45   :  { %v142_v43 = vld [vmem:[%s5350_s0 + $0x398] sm:$0xff] }
  0x46   :  { %v310_v47 = vpack.c.bf16 %v149_v44, %v142_v43  ;;  %v226_v43 = vld [vmem:[%s5350_s0 + $0x638] sm:$0xff]  ;;  %v233_v44 = vld [vmem:[%s5350_s0 + $0x670] sm:$0xff] }
  0x47   :  { %1401 = vmatpush1.bf16.msra.mxu0 %v3575_v46  ;;  %v302_v46 = vpack.c.bf16 %v134_v41, %v127_v40  ;;  %v211_v40 = vld [vmem:[%s5350_s0 + $0x5c0] sm:$0xff]  ;;  %v218_v41 = vld [vmem:[%s5350_s0 + $0x5f8] sm:$0xff] }
  0x48   :  { %1402 = vmatprep.subr.bf16.mxu0 %v3580_v49  ;;  %v3619_v49 = vld [vmem:[%s5349_s1 + $0x2f4] ss:$8 sps:$4 sm:$0xff]  }
  0x4a   :  { %1248 = vmatmul.mubr.bf16.gmra.mrb[4].mxu0 %v260_v51  ;;  %v3623_v51 = vld [vmem:[%s5349_s1 + $0x4] ss:$8 sps:$4 sm:$0xff]  }
  0x4b   :  { %1257 = vmatprep.mubr.bf16.mxu0 %v268_v53  ;;  %1403 = vmatpush1.bf16.msra.mxu0 %v3578_v50  ;;  %v141_v50 = vld [vmem:[%s5350_s0 + $0x390] sm:$0xff]  ;;  %v148_v53 = vld [vmem:[%s5350_s0 + $0x3c8] sm:$0xff] }
  0x4c   :  { %1404 = vmatprep.subr.bf16.mxu0 %v3583_v52  ;;  %v3625_v52 = vld [vmem:[%s5349_s1] ss:$8 sps:$4 sm:$0xff]   ;;  %1012 = vmatprep.subr.bf16.mxu1 %v3623_v51 }
  0x4d   :  { %1013 = vmatpush1.bf16.msra.mxu1 %v3625_v52  ;;  %v232_v51 = vld [vmem:[%s5350_s0 + $0x668] sm:$0xff]  ;;  %v3662_v52 = vld [vmem:[%s5349_s1 + $0xd4] ss:$8 sps:$4 sm:$0xff]  }
  0x4e   :  { %1014 = vmatprep.subr.bf16.mxu1 %v3626_v55 }
  0x4f   :  { %1405 = vmatpush1.bf16.msra.mxu0 %v3581_v58  ;;  %v3622_v58 = vld [vmem:[%s5349_s1 + $0x304] ss:$8 sps:$4 sm:$0xff]  }
  0x50   :  { %1406 = vmatprep.subr.bf16.mxu0 %v3586_v59  ;;  %v309_v59 = vpack.c.bf16 %v148_v53, %v141_v50  ;;  %v225_v50 = vld [vmem:[%s5350_s0 + $0x630] sm:$0xff]  ;;  %v240_v53 = vld [vmem:[%s5350_s0 + $0x6a8] sm:$0xff] }
  0x51   :  { %v351_v55 = vpack.c.bf16 %v232_v51, %v225_v50  ;;  %v95_v50 = vld [vmem:[%s5350_s0 + $0x220] sm:$0xff] }
  0x52   :  { %1258 = vmatmul.mubr.bf16.gmra.mrb[8].mxu0 %v267_v61  ;;  %v3628_v61 = vld [vmem:[%s5349_s1 + $0x10] ss:$8 sps:$4 sm:$0xff]  }
  0x53   :  { %1267 = vmatprep.mubr.bf16.mxu0 %v275_v62  ;;  %1407 = vmatpush1.bf16.msra.mxu0 %v3584_v60  ;;  %v317_v60 = vpack.c.bf16 %v163_v57, %v156_v56  ;;  %v3629_v62 = vld [vmem:[%s5349_s1 + $0x24] ss:$8 sps:$4 sm:$0xff]   ;;  %v3664_v57 = vld [vmem:[%s5349_s1 + $0xd0] ss:$8 sps:$4 sm:$0xff]  }
  0x54   :  { %1408 = vmatprep.subr.bf16.mxu0 %v3589_v63  ;;  %1015 = vmatpush1.bf16.msra.mxu1 %v3628_v61  ;;  %v3631_v63 = vld [vmem:[%s5349_s1 + $0x20] ss:$8 sps:$4 sm:$0xff]   ;;  %v246_v61 = vld [vmem:[%s5350_s0 + $0x6d8] sm:$0xff] }
  0x55   :  { %1016 = vmatprep.subr.bf16.mxu1 %v3629_v62  ;;  %v3668_v62 = vld [vmem:[%s5349_s1 + $0xf4] ss:$8 sps:$4 sm:$0xff]  }
  0x57   :  { %1409 = vmatpush1.bf16.msra.mxu0 %v3587_v2  ;;  %v3632_v2 = vld [vmem:[%s5349_s1 + $0x34] ss:$8 sps:$4 sm:$0xff]  }
  0x58   :  { %1410 = vmatprep.subr.bf16.mxu0 %v3592_v5  ;;  %v316_v5 = vpack.c.bf16 %v162_v1, %v155_v0  ;;  %1017 = vmatpush1.bf16.msra.mxu1 %v3631_v63  ;;  %v32_v63 = vld [vmem:[%s5350_s0 + $0x28] sm:$0xff]  ;;  %v39_v0 = vld [vmem:[%s5350_s0 + $0x60] sm:$0xff] }
  0x59   :  { %1018 = vmatprep.subr.bf16.mxu1 %v3632_v2  ;;  %v256_v2 = vpack.c.bf16 %v39_v0, %v32_v63 }
  0x5a   :  { %1268 = vmatmul.mubr.bf16.gmra.mrb[12].mxu0 %v274_v6  ;;  %v324_v6 = vpack.c.bf16 %v177_v4, %v170_v3  ;;  %v3670_v3 = vld [vmem:[%s5349_s1 + $0xf0] ss:$8 sps:$4 sm:$0xff]   ;;  %v28_v4 = vld [vmem:[%s5350_s0 + $0x8] sm:$0xff] }
  0x5b   :  { %1277 = vmatprep.mubr.bf16.mxu0 %v282_v7  ;;  %1411 = vmatpush1.bf16.msra.mxu0 %v3590_v8  ;;  %v3634_v7 = vld [vmem:[%s5349_s1 + $0x30] ss:$8 sps:$4 sm:$0xff]   ;;  %v3635_v8 = vld [vmem:[%s5349_s1 + $0x44] ss:$8 sps:$4 sm:$0xff]  }
  0x5c   :  { %1412 = vmatprep.subr.bf16.mxu0 %v3595_v9  ;;  %1019 = vmatpush1.bf16.msra.mxu1 %v3634_v7  ;;  %v3637_v9 = vld [vmem:[%s5349_s1 + $0x40] ss:$8 sps:$4 sm:$0xff]  }
  0x5d   :  { %1020 = vmatprep.subr.bf16.mxu1 %v3635_v8  ;;  %v27_v7 = vld [vmem:[%s5350_s0] sm:$0xff]  ;;  %v34_v8 = vld [vmem:[%s5350_s0 + $0x38] sm:$0xff] }
  0x5f   :  { %1413 = vmatpush1.bf16.msra.mxu0 %v3593_v12  ;;  %v3638_v12 = vld [vmem:[%s5349_s1 + $0x54] ss:$8 sps:$4 sm:$0xff]  }
  0x60   :  { %1414 = vmatprep.subr.bf16.mxu0 %v3598_v15  ;;  %v323_v15 = vpack.c.bf16 %v176_v11, %v169_v10  ;;  %1021 = vmatpush1.bf16.msra.mxu1 %v3637_v9  ;;  %v31_v9 = vld [vmem:[%s5350_s0 + $0x20] sm:$0xff]  ;;  %v38_v10 = vld [vmem:[%s5350_s0 + $0x58] sm:$0xff]  ;;  %v251_v11 = vpack.c.bf16 %v34_v8, %v27_v7  ;;  %v108_v7 = vld [vmem:[%s5350_s0 + $0x288] sm:$0xff] }
  0x61   :  { %1022 = vmatprep.subr.bf16.mxu1 %v3638_v12  ;;  %v46_v12 = vld [vmem:[%s5350_s0 + $0x98] sm:$0xff] }
  0x62   :  { %1278 = vmatmul.mubr.bf16.gmra.mrb[16].mxu0 %v281_v16  ;;  %v331_v16 = vpack.c.bf16 %v191_v14, %v184_v13  ;;  %v53_v13 = vld [vmem:[%s5350_s0 + $0xd0] sm:$0xff]  ;;  %v255_v14 = vpack.c.bf16 %v38_v10, %v31_v9  ;;  %v116_v9 = vld [vmem:[%s5350_s0 + $0x2c8] sm:$0xff]  ;;  %v123_v10 = vld [vmem:[%s5350_s0 + $0x300] sm:$0xff] }
  0x63   :  { %1287 = vmatprep.mubr.bf16.mxu0 %v289_v17  ;;  %1415 = vmatpush1.bf16.msra.mxu0 %v3596_v18  ;;  %v3640_v17 = vld [vmem:[%s5349_s1 + $0x50] ss:$8 sps:$4 sm:$0xff]   ;;  %v3641_v18 = vld [vmem:[%s5349_s1 + $0x64] ss:$8 sps:$4 sm:$0xff]  }
  0x64   :  { %1416 = vmatprep.subr.bf16.mxu0 %v3601_v19  ;;  %1023 = vmatpush1.bf16.msra.mxu1 %v3640_v17  ;;  %v3643_v19 = vld [vmem:[%s5349_s1 + $0x60] ss:$8 sps:$4 sm:$0xff]   ;;  %v42_v17 = vld [vmem:[%s5350_s0 + $0x78] sm:$0xff] }
  0x65   :  { %1024 = vmatprep.subr.bf16.mxu1 %v3641_v18  ;;  %v49_v18 = vld [vmem:[%s5350_s0 + $0xb0] sm:$0xff] }
  0x67   :  { %1417 = vmatpush1.bf16.msra.mxu0 %v3599_v22  ;;  %v3644_v22 = vld [vmem:[%s5349_s1 + $0x74] ss:$8 sps:$4 sm:$0xff]  }
  0x68   :  { %1418 = vmatprep.subr.bf16.mxu0 %v3604_v25  ;;  %v330_v25 = vpack.c.bf16 %v190_v21, %v183_v20  ;;  %1025 = vmatpush1.bf16.msra.mxu1 %v3643_v19  ;;  %v259_v19 = vpack.c.bf16 %v49_v18, %v42_v17  ;;  %v41_v20 = vld [vmem:[%s5350_s0 + $0x70] sm:$0xff]  ;;  %v48_v21 = vld [vmem:[%s5350_s0 + $0xa8] sm:$0xff]  ;;  %v118_v17 = vld [vmem:[%s5350_s0 + $0x2d8] sm:$0xff] }
  0x69   :  { %1026 = vmatprep.subr.bf16.mxu1 %v3644_v22  ;;  %v45_v22 = vld [vmem:[%s5350_s0 + $0x90] sm:$0xff]  ;;  %v115_v18 = vld [vmem:[%s5350_s0 + $0x2c0] sm:$0xff] }
  0x6a   :  { %1288 = vmatmul.mubr.bf16.gmra.mrb[20].mxu0 %v288_v26  ;;  %v338_v26 = vpack.c.bf16 %v205_v24, %v198_v23  ;;  %v52_v23 = vld [vmem:[%s5350_s0 + $0xc8] sm:$0xff]  ;;  %v258_v24 = vpack.c.bf16 %v48_v21, %v41_v20  ;;  %v130_v21 = vld [vmem:[%s5350_s0 + $0x338] sm:$0xff] }
  0x6b   :  { %1297 = vmatprep.mubr.bf16.mxu0 %v296_v27  ;;  %1419 = vmatpush1.bf16.msra.mxu0 %v3602_v28  ;;  %v3646_v27 = vld [vmem:[%s5349_s1 + $0x70] ss:$8 sps:$4 sm:$0xff]   ;;  %v3647_v28 = vld [vmem:[%s5349_s1 + $0x84] ss:$8 sps:$4 sm:$0xff]  }
  0x6c   :  { %1420 = vmatprep.subr.bf16.mxu0 %v3607_v29  ;;  %1027 = vmatpush1.bf16.msra.mxu1 %v3646_v27  ;;  %v3649_v29 = vld [vmem:[%s5349_s1 + $0x80] ss:$8 sps:$4 sm:$0xff]   ;;  %v262_v27 = vpack.c.bf16 %v52_v23, %v45_v22  ;;  %v137_v22 = vld [vmem:[%s5350_s0 + $0x370] sm:$0xff] }
  0x6d   :  { %1028 = vmatprep.subr.bf16.mxu1 %v3647_v28 }
  0x6f   :  { %1421 = vmatpush1.bf16.msra.mxu0 %v3605_v32  ;;  %v3650_v32 = vld [vmem:[%s5349_s1 + $0x94] ss:$8 sps:$4 sm:$0xff]  }
  0x70   :  { %1422 = vmatprep.subr.bf16.mxu0 %v3610_v35  ;;  %v337_v35 = vpack.c.bf16 %v204_v31, %v197_v30  ;;  %1029 = vmatpush1.bf16.msra.mxu1 %v3649_v29  ;;  %v56_v29 = vld [vmem:[%s5350_s0 + $0xe8] sm:$0xff]  ;;  %v63_v30 = vld [vmem:[%s5350_s0 + $0x120] sm:$0xff] }
  0x71   :  { %1030 = vmatprep.subr.bf16.mxu1 %v3650_v32  ;;  %v266_v31 = vpack.c.bf16 %v63_v30, %v56_v29  ;;  %v55_v32 = vld [vmem:[%s5350_s0 + $0xe0] sm:$0xff]  ;;  %v132_v29 = vld [vmem:[%s5350_s0 + $0x348] sm:$0xff]  ;;  %v129_v30 = vld [vmem:[%s5350_s0 + $0x330] sm:$0xff] }
  0x72   :  { %1298 = vmatmul.mubr.bf16.gmra.mrb[24].mxu0 %v295_v36  ;;  %v345_v36 = vpack.c.bf16 %v219_v34, %v212_v33  ;;  %v62_v33 = vld [vmem:[%s5350_s0 + $0x118] sm:$0xff]  ;;  %v59_v34 = vld [vmem:[%s5350_s0 + $0x100] sm:$0xff] }
  0x73   :  { %1307 = vmatprep.mubr.bf16.mxu0 %v303_v37  ;;  %1423 = vmatpush1.bf16.msra.mxu0 %v3608_v38  ;;  %v3652_v37 = vld [vmem:[%s5349_s1 + $0x90] ss:$8 sps:$4 sm:$0xff]   ;;  %v3653_v38 = vld [vmem:[%s5349_s1 + $0xa4] ss:$8 sps:$4 sm:$0xff]  }
  0x74   :  { %1424 = vmatprep.subr.bf16.mxu0 %v3613_v39  ;;  %1031 = vmatpush1.bf16.msra.mxu1 %v3652_v37  ;;  %v3655_v39 = vld [vmem:[%s5349_s1 + $0xa0] ss:$8 sps:$4 sm:$0xff]   ;;  %v74_v37 = vld [vmem:[%s5350_s0 + $0x178] sm:$0xff] }
  0x75   :  { %1032 = vmatprep.subr.bf16.mxu1 %v3653_v38  ;;  %v81_v38 = vld [vmem:[%s5350_s0 + $0x1b0] sm:$0xff] }
  0x77   :  { %1425 = vmatpush1.bf16.msra.mxu0 %v3611_v42  ;;  %v3656_v42 = vld [vmem:[%s5349_s1 + $0xb4] ss:$8 sps:$4 sm:$0xff]  }
  0x78   :  { %1426 = vmatprep.subr.bf16.mxu0 %v3616_v45  ;;  %v344_v45 = vpack.c.bf16 %v218_v41, %v211_v40  ;;  %1033 = vmatpush1.bf16.msra.mxu1 %v3655_v39  ;;  %v277_v40 = vpack.c.bf16 %v81_v38, %v74_v37  ;;  %v70_v41 = vld [vmem:[%s5350_s0 + $0x158] sm:$0xff]  ;;  %v140_v37 = vld [vmem:[%s5350_s0 + $0x388] sm:$0xff]  ;;  %v147_v38 = vld [vmem:[%s5350_s0 + $0x3c0] sm:$0xff] }
  0x79   :  { %1034 = vmatprep.subr.bf16.mxu1 %v3656_v42  ;;  %v77_v42 = vld [vmem:[%s5350_s0 + $0x190] sm:$0xff] }
  0x7a   :  { %1308 = vmatmul.mubr.bf16.gmra.mrb[28].mxu0 %v302_v46  ;;  %v352_v46 = vpack.c.bf16 %v233_v44, %v226_v43  ;;  %v273_v43 = vpack.c.bf16 %v77_v42, %v70_v41  ;;  %v69_v44 = vld [vmem:[%s5350_s0 + $0x150] sm:$0xff]  ;;  %v146_v41 = vld [vmem:[%s5350_s0 + $0x3b8] sm:$0xff]  ;;  %v143_v42 = vld [vmem:[%s5350_s0 + $0x3a0] sm:$0xff] }
  0x7b   :  { %1317 = vmatprep.mubr.bf16.mxu0 %v310_v47  ;;  %1427 = vmatpush1.bf16.msra.mxu0 %v3614_v48  ;;  %v3658_v47 = vld [vmem:[%s5349_s1 + $0xb0] ss:$8 sps:$4 sm:$0xff]   ;;  %v3659_v48 = vld [vmem:[%s5349_s1 + $0xc4] ss:$8 sps:$4 sm:$0xff]  }
  0x7c   :  { %1428 = vmatprep.subr.bf16.mxu0 %v3619_v49  ;;  %1035 = vmatpush1.bf16.msra.mxu1 %v3658_v47  ;;  %v3661_v49 = vld [vmem:[%s5349_s1 + $0xc0] ss:$8 sps:$4 sm:$0xff]  }
  0x7d   :  { %1036 = vmatprep.subr.bf16.mxu1 %v3659_v48  ;;  %v80_v47 = vld [vmem:[%s5350_s0 + $0x1a8] sm:$0xff] }
  0x7f   :  { %1429 = vmatpush1.bf16.msra.mxu0 %v3617_v54  ;;  %v247_v54 = vld [vmem:[%s5350_s0 + $0x6e0] sm:$0xff] }
  0x80   :  { %1591 = vmatprep.subr.bf16.mxu0 %v3622_v58  ;;  %1037 = vmatpush1.bf16.msra.mxu1 %v3661_v49  ;;  %v359_v56 = vpack.c.bf16 %v247_v54, %v240_v53  ;;  %v3665_v58 = vld [vmem:[%s5349_s1 + $0xe4] ss:$8 sps:$4 sm:$0xff]  }
  0x81   :  { %1038 = vmatprep.subr.bf16.mxu1 %v3662_v52  ;;  %v88_v49 = vld [vmem:[%s5350_s0 + $0x1e8] sm:$0xff]  ;;  %v91_v54 = vld [vmem:[%s5350_s0 + $0x200] sm:$0xff] }
  0x82   :  { %1318 = vmatmul.mubr.bf16.gmra.mrb[32].mxu0 %v309_v59  ;;  %v3667_v59 = vld [vmem:[%s5349_s1 + $0xe0] ss:$8 sps:$4 sm:$0xff]   ;;  %v284_v52 = vpack.c.bf16 %v95_v50, %v88_v49  ;;  %v154_v49 = vld [vmem:[%s5350_s0 + $0x3f8] sm:$0xff]  ;;  %v161_v50 = vld [vmem:[%s5350_s0 + $0x430] sm:$0xff] }
  0x83   :  { %1327 = vmatprep.mubr.bf16.mxu0 %v317_v60  ;;  %v239_v60 = vld [vmem:[%s5350_s0 + $0x6a0] sm:$0xff]  ;;  %v84_v53 = vld [vmem:[%s5350_s0 + $0x1c8] sm:$0xff] }
  0x84   :  { %1039 = vmatpush1.bf16.msra.mxu1 %v3664_v57  ;;  %v358_v1 = vpack.c.bf16 %v246_v61, %v239_v60  ;;  %v90_v57 = vld [vmem:[%s5350_s0 + $0x1f8] sm:$0xff] }
  0x85   :  { %1040 = vmatprep.subr.bf16.mxu1 %v3665_v58  ;;  %v87_v58 = vld [vmem:[%s5350_s0 + $0x1e0] sm:$0xff]  ;;  %v102_v61 = vld [vmem:[%s5350_s0 + $0x258] sm:$0xff] }
  0x88   :  { %1041 = vmatpush1.bf16.msra.mxu1 %v3667_v59  ;;  %v94_v59 = vld [vmem:[%s5350_s0 + $0x218] sm:$0xff] }
  0x89   :  { %1042 = vmatprep.subr.bf16.mxu1 %v3668_v62  ;;  %v109_v62 = vld [vmem:[%s5350_s0 + $0x290] sm:$0xff]  ;;  %v283_v63 = vpack.c.bf16 %v94_v59, %v87_v58  ;;  %v179_v58 = vld [vmem:[%s5350_s0 + $0x4c0] sm:$0xff] }
  0x8a   :  { %1328 = vmatmul.mubr.bf16.gmra.mrb[36].mxu0 %v316_v5  ;;  %v35_v5 = vld [vmem:[%s5350_s0 + $0x40] sm:$0xff]  ;;  %v291_v0 = vpack.c.bf16 %v109_v62, %v102_v61  ;;  %v168_v61 = vld [vmem:[%s5350_s0 + $0x468] sm:$0xff] }
  0x8b   :  { %1337 = vmatprep.mubr.bf16.mxu0 %v324_v6  ;;  %v252_v6 = vpack.c.bf16 %v35_v5, %v28_v4  ;;  %v97_v4 = vld [vmem:[%s5350_s0 + $0x230] sm:$0xff]  ;;  %v104_v5 = vld [vmem:[%s5350_s0 + $0x268] sm:$0xff]  ;;  %v175_v62 = vld [vmem:[%s5350_s0 + $0x4a0] sm:$0xff] }
  0x8c   :  { %1043 = vmatpush1.bf16.msra.mxu1 %v3670_v3  ;;  %v286_v8 = vpack.c.bf16 %v104_v5, %v97_v4  ;;  %v186_v5 = vld [vmem:[%s5350_s0 + $0x4f8] sm:$0xff] }
  0x8d   :  { %1044 = vmatprep.mubr.bf16.mxu1 %v252_v6  ;;  %v101_v6 = vld [vmem:[%s5350_s0 + $0x250] sm:$0xff] }
  0x8f   :  { %1045 = vmatmul.mubr.bf16.vlgmr.msra.gmra.mrb[0].mxu1 %v251_v11  ;;  %v290_v11 = vpack.c.bf16 %v108_v7, %v101_v6  ;;  %v193_v6 = vld [vmem:[%s5350_s0 + $0x530] sm:$0xff] }
  0x90   :  { %1054 = vmatprep.mubr.bf16.mxu1 %v259_v19  ;;  %v122_v19 = vld [vmem:[%s5350_s0 + $0x2f8] sm:$0xff] }
  0x91   :  { %v297_v23 = vpack.c.bf16 %v122_v19, %v115_v18  ;;  %v207_v18 = vld [vmem:[%s5350_s0 + $0x5a0] sm:$0xff] }
  0x92   :  { %1338 = vmatmul.mubr.bf16.gmra.mrb[40].mxu0 %v323_v15  ;;  %v3620_v15 = vld [vmem:[%s5349_s1 + $0x300] ss:$8 sps:$4 sm:$0xff]  }
  0x93   :  { %1347 = vmatprep.mubr.bf16.mxu0 %v331_v16  ;;  %v263_v16 = vpack.c.bf16 %v53_v13, %v46_v12  ;;  %v298_v12 = vpack.c.bf16 %v123_v10, %v116_v9  ;;  %v112_v13 = vld [vmem:[%s5350_s0 + $0x2a8] sm:$0xff]  ;;  %v182_v9 = vld [vmem:[%s5350_s0 + $0x4d8] sm:$0xff]  ;;  %v189_v10 = vld [vmem:[%s5350_s0 + $0x510] sm:$0xff] }
  0x97   :  { %1055 = vmatmul.mubr.bf16.gmra.mrb[4].mxu1 %v258_v24  ;;  %v305_v24 = vpack.c.bf16 %v137_v22, %v130_v21  ;;  %v199_v21 = vld [vmem:[%s5350_s0 + $0x560] sm:$0xff]  ;;  %v196_v22 = vld [vmem:[%s5350_s0 + $0x548] sm:$0xff] }
  0x98   :  { %1064 = vmatprep.mubr.bf16.mxu1 %v266_v31  ;;  %v136_v31 = vld [vmem:[%s5350_s0 + $0x368] sm:$0xff] }
  0x9a   :  { %1348 = vmatmul.mubr.bf16.gmra.mrb[44].mxu0 %v330_v25  ;;  %v60_v25 = vld [vmem:[%s5350_s0 + $0x108] sm:$0xff] }
  0x9b   :  { %1357 = vmatprep.mubr.bf16.mxu0 %v338_v26  ;;  %v67_v26 = vld [vmem:[%s5350_s0 + $0x140] sm:$0xff] }
  0x9c   :  { %v270_v28 = vpack.c.bf16 %v67_v26, %v60_v25  ;;  %v126_v25 = vld [vmem:[%s5350_s0 + $0x318] sm:$0xff]  ;;  %v133_v26 = vld [vmem:[%s5350_s0 + $0x350] sm:$0xff] }
  0xa2   :  { %1358 = vmatmul.mubr.bf16.gmra.mrb[48].mxu0 %v337_v35  ;;  %v66_v35 = vld [vmem:[%s5350_s0 + $0x138] sm:$0xff] }
  0xa3   :  { %1367 = vmatprep.mubr.bf16.mxu0 %v345_v36  ;;  %v265_v36 = vpack.c.bf16 %v62_v33, %v55_v32  ;;  %v269_v39 = vpack.c.bf16 %v66_v35, %v59_v34  ;;  %v144_v33 = vld [vmem:[%s5350_s0 + $0x3a8] sm:$0xff]  ;;  %v151_v34 = vld [vmem:[%s5350_s0 + $0x3e0] sm:$0xff]  ;;  %v304_v35 = vpack.c.bf16 %v136_v31, %v129_v30  ;;  %v214_v30 = vld [vmem:[%s5350_s0 + $0x5d8] sm:$0xff] }
  0xa4   :  { %v221_v31 = vld [vmem:[%s5350_s0 + $0x610] sm:$0xff] }
  0xa5   :  { %1065 = vmatmul.mubr.bf16.gmra.mrb[8].mxu1 %v265_v36  ;;  %v312_v36 = vpack.c.bf16 %v151_v34, %v144_v33  ;;  %v347_v34 = vpack.c.bf16 %v221_v31, %v214_v30  ;;  %v3698_v30 = vld [vmem:[%s5351_s3 + $0x90] ss:$8 sps:$4 sm:$0xff]  }
  0xa6   :  { %1074 = vmatprep.mubr.bf16.mxu1 %v273_v43  ;;  %v150_v43 = vld [vmem:[%s5350_s0 + $0x3d8] sm:$0xff] }
  0xaa   :  { %1368 = vmatmul.mubr.bf16.gmra.mrb[52].mxu0 %v344_v45  ;;  %v76_v45 = vld [vmem:[%s5350_s0 + $0x188] sm:$0xff] }
  0xab   :  { %1377 = vmatprep.mubr.bf16.mxu0 %v352_v46  ;;  %v73_v46 = vld [vmem:[%s5350_s0 + $0x170] sm:$0xff]  ;;  %v272_v48 = vpack.c.bf16 %v76_v45, %v69_v44  ;;  %v158_v45 = vld [vmem:[%s5350_s0 + $0x418] sm:$0xff] }
  0xac   :  { %v276_v51 = vpack.c.bf16 %v80_v47, %v73_v46  ;;  %v165_v46 = vld [vmem:[%s5350_s0 + $0x450] sm:$0xff]  ;;  %v311_v47 = vpack.c.bf16 %v150_v43, %v143_v42  ;;  %v228_v43 = vld [vmem:[%s5350_s0 + $0x648] sm:$0xff] }
  0xad   :  { %1075 = vmatmul.mubr.bf16.gmra.mrb[12].mxu1 %v272_v48  ;;  %v319_v48 = vpack.c.bf16 %v165_v46, %v158_v45  ;;  %v3674_v42 = vld [vmem:[%s5351_s3 + $0x10] ss:$8 sps:$4 sm:$0xff]   ;;  %v3676_v46 = vld [vmem:[%s5351_s3 + $0x14] ss:$8 sps:$4 sm:$0xff]  }
  0xb2   :  { %1378 = vmatmul.mubr.bf16.gmra.mrb[56].mxu0 %v351_v55  ;;  %v280_v55 = vpack.c.bf16 %v91_v54, %v84_v53  ;;  %v160_v53 = vld [vmem:[%s5350_s0 + $0x428] sm:$0xff]  ;;  %v157_v54 = vld [vmem:[%s5350_s0 + $0x410] sm:$0xff] }
  0xb3   :  { %1387 = vmatprep.mubr.bf16.mxu0 %v359_v56  ;;  %v83_v56 = vld [vmem:[%s5350_s0 + $0x1c0] sm:$0xff] }
  0xb4   :  { %v279_v60 = vpack.c.bf16 %v90_v57, %v83_v56  ;;  %1084 = vmatprep.mubr.bf16.mxu1 %v280_v55  ;;  %v164_v55 = vld [vmem:[%s5350_s0 + $0x448] sm:$0xff] }
  0xb5   :  { %v172_v57 = vld [vmem:[%s5350_s0 + $0x488] sm:$0xff]  ;;  %v318_v59 = vpack.c.bf16 %v164_v55, %v157_v54  ;;  %v227_v55 = vld [vmem:[%s5350_s0 + $0x640] sm:$0xff] }
  0xb6   :  { %1085 = vmatmul.mubr.bf16.gmra.mrb[16].mxu1 %v279_v60  ;;  %v326_v60 = vpack.c.bf16 %v179_v58, %v172_v57  ;;  %v3677_v54 = vld [vmem:[%s5351_s3 + $0x20] ss:$8 sps:$4 sm:$0xff]   ;;  %v3679_v58 = vld [vmem:[%s5351_s3 + $0x24] ss:$8 sps:$4 sm:$0xff]  }
  0xba   :  { %1388 = vmatmul.mubr.bf16.gmra.mrb[60].mxu0 %v358_v1  ;;  %v98_v1 = vld [vmem:[%s5350_s0 + $0x238] sm:$0xff] }
  0xbb   :  { %1430 = vmatprep.mubr.bf16.mxu0 %v256_v2  ;;  %v105_v2 = vld [vmem:[%s5350_s0 + $0x270] sm:$0xff] }
  0xbc   :  { %v287_v3 = vpack.c.bf16 %v105_v2, %v98_v1  ;;  %v174_v1 = vld [vmem:[%s5350_s0 + $0x498] sm:$0xff]  ;;  %v171_v2 = vld [vmem:[%s5350_s0 + $0x480] sm:$0xff] }
  0xbe   :  { %1094 = vmatprep.mubr.bf16.mxu1 %v287_v3  ;;  %v178_v3 = vld [vmem:[%s5350_s0 + $0x4b8] sm:$0xff] }
  0xbf   :  { %1095 = vmatmul.mubr.bf16.gmra.mrb[20].mxu1 %v286_v8  ;;  %v325_v7 = vpack.c.bf16 %v178_v3, %v171_v2  ;;  %v333_v8 = vpack.c.bf16 %v193_v6, %v186_v5  ;;  %v237_v2 = vld [vmem:[%s5350_s0 + $0x690] sm:$0xff]  ;;  %v244_v3 = vld [vmem:[%s5350_s0 + $0x6c8] sm:$0xff] }
  0xc0   :  { %v241_v5 = vld [vmem:[%s5350_s0 + $0x6b0] sm:$0xff]  ;;  %v248_v6 = vld [vmem:[%s5350_s0 + $0x6e8] sm:$0xff] }
  0xc2   :  { %1431 = vmatmul.mubr.bf16.vlgmr.msra.gmra.mrb[0].mxu0 %v255_v14  ;;  %v119_v14 = vld [vmem:[%s5350_s0 + $0x2e0] sm:$0xff] }
  0xc3   :  { %1592 = vmatpush1.bf16.msra.mxu0 %v3620_v15  ;;  %1440 = vmatprep.mubr.bf16.mxu0 %v263_v16  ;;  %v294_v15 = vpack.c.bf16 %v119_v14, %v112_v13  ;;  %v111_v16 = vld [vmem:[%s5350_s0 + $0x2a0] sm:$0xff]  ;;  %v188_v13 = vld [vmem:[%s5350_s0 + $0x508] sm:$0xff]  ;;  %v185_v14 = vld [vmem:[%s5350_s0 + $0x4f0] sm:$0xff] }
  0xc4   :  { %v293_v20 = vpack.c.bf16 %v118_v17, %v111_v16  ;;  %v200_v17 = vld [vmem:[%s5350_s0 + $0x568] sm:$0xff] }
  0xc5   :  { %1104 = vmatprep.mubr.bf16.mxu1 %v294_v15  ;;  %v192_v15 = vld [vmem:[%s5350_s0 + $0x528] sm:$0xff] }
  0xc6   :  { %v332_v19 = vpack.c.bf16 %v192_v15, %v185_v14  ;;  %v40_v14 = vld [vmem:[%s5350_s0 + $0x68] sm:$0xff]  ;;  %v3688_v15 = vld [vmem:[%s5351_s3 + $0x54] ss:$8 sps:$4 sm:$0xff]  }
  0xc7   :  { %1105 = vmatmul.mubr.bf16.gmra.mrb[24].mxu1 %v293_v20  ;;  %v340_v20 = vpack.c.bf16 %v207_v18, %v200_v17  ;;  %v3691_v18 = vld [vmem:[%s5351_s3 + $0x64] ss:$8 sps:$4 sm:$0xff]  }
  0xca   :  { %1441 = vmatmul.mubr.bf16.gmra.mrb[4].mxu0 %v262_v27  ;;  %v301_v27 = vpack.c.bf16 %v133_v26, %v126_v25  ;;  %v195_v26 = vld [vmem:[%s5350_s0 + $0x540] sm:$0xff] }
  0xcb   :  { %1450 = vmatprep.mubr.bf16.mxu0 %v270_v28  ;;  %v125_v28 = vld [vmem:[%s5350_s0 + $0x310] sm:$0xff] }
  0xcc   :  { %v300_v32 = vpack.c.bf16 %v132_v29, %v125_v28  ;;  %1114 = vmatprep.mubr.bf16.mxu1 %v301_v27  ;;  %v202_v27 = vld [vmem:[%s5350_s0 + $0x578] sm:$0xff]  ;;  %v3671_v29 = vld [vmem:[%s5351_s3] ss:$8 sps:$4 sm:$0xff]  }
  0xcd   :  { %v335_v28 = vpack.c.bf16 %v202_v27, %v195_v26  ;;  %v3695_v26 = vld [vmem:[%s5351_s3 + $0x80] ss:$8 sps:$4 sm:$0xff]   ;;  %v3700_v27 = vld [vmem:[%s5351_s3 + $0x94] ss:$8 sps:$4 sm:$0xff]  }
  0xcf   :  { %1115 = vmatmul.mubr.bf16.gmra.mrb[28].mxu1 %v300_v32  ;;  %v3673_v32 = vld [vmem:[%s5351_s3 + $0x4] ss:$8 sps:$4 sm:$0xff]  }
  0xd0   :  { %2084 = vmatprep.subr.bf16.mxu1 %v3673_v32  ;;  %v3703_v32 = vld [vmem:[%s5351_s3 + $0xa4] ss:$8 sps:$4 sm:$0xff]  }
  0xd1   :  { %2085 = vmatpush1.bf16.msra.mxu1 %v3671_v29  ;;  %v68_v29 = vld [vmem:[%s5350_s0 + $0x148] sm:$0xff] }
  0xd2   :  { %1451 = vmatmul.mubr.bf16.gmra.mrb[8].mxu0 %v269_v39  ;;  %v308_v39 = vpack.c.bf16 %v147_v38, %v140_v37  ;;  %v210_v37 = vld [vmem:[%s5350_s0 + $0x5b8] sm:$0xff]  ;;  %v217_v38 = vld [vmem:[%s5350_s0 + $0x5f0] sm:$0xff]  ;;  %2086 = vmatprep.subr.bf16.mxu1 %v3676_v46  ;;  %v3715_v46 = vld [vmem:[%s5351_s3 + $0xe4] ss:$8 sps:$4 sm:$0xff]  }
  0xd3   :  { %1460 = vmatprep.mubr.bf16.mxu0 %v277_v40  ;;  %v139_v40 = vld [vmem:[%s5350_s0 + $0x380] sm:$0xff] }
  0xd4   :  { %v307_v44 = vpack.c.bf16 %v146_v41, %v139_v40  ;;  %1124 = vmatprep.mubr.bf16.mxu1 %v308_v39  ;;  %v343_v39 = vpack.c.bf16 %v217_v38, %v210_v37  ;;  %v209_v40 = vld [vmem:[%s5350_s0 + $0x5b0] sm:$0xff]  ;;  %v216_v41 = vld [vmem:[%s5350_s0 + $0x5e8] sm:$0xff] }
  0xd5   :  { %v342_v45 = vpack.c.bf16 %v216_v41, %v209_v40  ;;  %2087 = vmatpush1.bf16.msra.mxu1 %v3674_v42  ;;  %v3704_v37 = vld [vmem:[%s5351_s3 + $0xb0] ss:$8 sps:$4 sm:$0xff]   ;;  %v3707_v40 = vld [vmem:[%s5351_s3 + $0xc0] ss:$8 sps:$4 sm:$0xff]   ;;  %v3712_v41 = vld [vmem:[%s5351_s3 + $0xd4] ss:$8 sps:$4 sm:$0xff]  }
  0xd6   :  { %2088 = vmatprep.subr.bf16.mxu1 %v3679_v58  ;;  %v89_v42 = vld [vmem:[%s5350_s0 + $0x1f0] sm:$0xff]  ;;  %v152_v58 = vld [vmem:[%s5350_s0 + $0x3e8] sm:$0xff] }
  0xd7   :  { %1125 = vmatmul.mubr.bf16.gmra.mrb[32].mxu1 %v307_v44  ;;  %v235_v44 = vld [vmem:[%s5350_s0 + $0x680] sm:$0xff] }
  0xd9   :  { %2089 = vmatpush1.bf16.msra.mxu1 %v3677_v54  ;;  %v131_v54 = vld [vmem:[%s5350_s0 + $0x340] sm:$0xff] }
  0xda   :  { %1461 = vmatmul.mubr.bf16.gmra.mrb[12].mxu0 %v276_v51  ;;  %v315_v51 = vpack.c.bf16 %v161_v50, %v154_v49  ;;  %v224_v49 = vld [vmem:[%s5350_s0 + $0x628] sm:$0xff]  ;;  %v231_v50 = vld [vmem:[%s5350_s0 + $0x660] sm:$0xff] }
  0xdb   :  { %1470 = vmatprep.mubr.bf16.mxu0 %v284_v52  ;;  %v153_v52 = vld [vmem:[%s5350_s0 + $0x3f0] sm:$0xff] }
  0xdc   :  { %v314_v56 = vpack.c.bf16 %v160_v53, %v153_v52  ;;  %1134 = vmatprep.mubr.bf16.mxu1 %v315_v51  ;;  %v350_v51 = vpack.c.bf16 %v231_v50, %v224_v49  ;;  %v223_v52 = vld [vmem:[%s5350_s0 + $0x620] sm:$0xff]  ;;  %v230_v53 = vld [vmem:[%s5350_s0 + $0x658] sm:$0xff] }
  0xdd   :  { %v349_v57 = vpack.c.bf16 %v230_v53, %v223_v52  ;;  %v110_v49 = vld [vmem:[%s5350_s0 + $0x298] sm:$0xff]  ;;  %v124_v52 = vld [vmem:[%s5350_s0 + $0x308] sm:$0xff] }
  0xdf   :  { %1135 = vmatmul.mubr.bf16.gmra.mrb[36].mxu1 %v314_v56  ;;  %v234_v56 = vld [vmem:[%s5350_s0 + $0x678] sm:$0xff] }
  0xe2   :  { %1471 = vmatmul.mubr.bf16.gmra.mrb[16].mxu0 %v283_v63  ;;  %v322_v63 = vpack.c.bf16 %v175_v62, %v168_v61  ;;  %v353_v61 = vpack.c.bf16 %v234_v56, %v227_v55  ;;  %v138_v55 = vld [vmem:[%s5350_s0 + $0x378] sm:$0xff] }
  0xe3   :  { %1480 = vmatprep.mubr.bf16.mxu0 %v291_v0  ;;  %v167_v0 = vld [vmem:[%s5350_s0 + $0x460] sm:$0xff]  ;;  %v306_v56 = vpack.c.bf16 %v138_v55, %v131_v54 }
  0xe4   :  { %v321_v4 = vpack.c.bf16 %v174_v1, %v167_v0  ;;  %1144 = vmatprep.mubr.bf16.mxu1 %v322_v63  ;;  %v238_v63 = vld [vmem:[%s5350_s0 + $0x698] sm:$0xff]  ;;  %v245_v0 = vld [vmem:[%s5350_s0 + $0x6d0] sm:$0xff] }
  0xe5   :  { %v357_v1 = vpack.c.bf16 %v245_v0, %v238_v63  ;;  %v173_v63 = vld [vmem:[%s5350_s0 + $0x490] sm:$0xff]  ;;  %v180_v0 = vld [vmem:[%s5350_s0 + $0x4c8] sm:$0xff] }
  0xe7   :  { %1145 = vmatmul.mubr.bf16.gmra.mrb[40].mxu1 %v321_v4  ;;  %v3680_v4 = vld [vmem:[%s5351_s3 + $0x30] ss:$8 sps:$4 sm:$0xff]  }
  0xea   :  { %1481 = vmatmul.mubr.bf16.gmra.mrb[20].mxu0 %v290_v11  ;;  %v329_v11 = vpack.c.bf16 %v189_v10, %v182_v9  ;;  %v360_v9 = vpack.c.bf16 %v248_v6, %v241_v5  ;;  %v3683_v10 = vld [vmem:[%s5351_s3 + $0x40] ss:$8 sps:$4 sm:$0xff]   ;;  %v194_v6 = vld [vmem:[%s5350_s0 + $0x538] sm:$0xff] }
  0xeb   :  { %1490 = vmatprep.mubr.bf16.mxu0 %v298_v12  ;;  %v181_v12 = vld [vmem:[%s5350_s0 + $0x4d0] sm:$0xff]  ;;  %v187_v5 = vld [vmem:[%s5350_s0 + $0x500] sm:$0xff] }
  0xec   :  { %v328_v16 = vpack.c.bf16 %v188_v13, %v181_v12  ;;  %1154 = vmatprep.mubr.bf16.mxu1 %v329_v11  ;;  %v3685_v11 = vld [vmem:[%s5351_s3 + $0x44] ss:$8 sps:$4 sm:$0xff]   ;;  %v3735_v12 = vmov 0   ;;  %v33_v13 = vld [vmem:[%s5350_s0 + $0x30] sm:$0xff] }
  0xed   :  { %v257_v17 = vpack.c.bf16 %v40_v14, %v33_v13  ;;  %v201_v14 = vld [vmem:[%s5350_s0 + $0x570] sm:$0xff] }
  0xef   :  { %1155 = vmatmul.mubr.bf16.gmra.mrb[44].mxu1 %v328_v16  ;;  %v3686_v16 = vld [vmem:[%s5351_s3 + $0x50] ss:$8 sps:$4 sm:$0xff]  }
  0xf2   :  { %1491 = vmatmul.mubr.bf16.gmra.mrb[24].mxu0 %v297_v23  ;;  %v203_v23 = vld [vmem:[%s5350_s0 + $0x580] sm:$0xff] }
  0xf3   :  { %1500 = vmatprep.mubr.bf16.mxu0 %v305_v24  ;;  %v206_v24 = vld [vmem:[%s5350_s0 + $0x598] sm:$0xff]  ;;  %v336_v25 = vpack.c.bf16 %v203_v23, %v196_v22 }
  0xf4   :  { %v339_v33 = vpack.c.bf16 %v206_v24, %v199_v21  ;;  %v47_v21 = vld [vmem:[%s5350_s0 + $0xa0] sm:$0xff]  ;;  %v54_v22 = vld [vmem:[%s5350_s0 + $0xd8] sm:$0xff] }
  0xf5   :  { %1164 = vmatprep.mubr.bf16.mxu1 %v336_v25  ;;  %v3692_v23 = vld [vmem:[%s5351_s3 + $0x70] ss:$8 sps:$4 sm:$0xff]   ;;  %v264_v24 = vpack.c.bf16 %v54_v22, %v47_v21  ;;  %v3697_v25 = vld [vmem:[%s5351_s3 + $0x84] ss:$8 sps:$4 sm:$0xff]  }
  0xf6   :  { %v215_v22 = vld [vmem:[%s5350_s0 + $0x5e0] sm:$0xff] }
  0xf7   :  { %1165 = vmatmul.mubr.bf16.gmra.mrb[48].mxu1 %v335_v28  ;;  %v61_v28 = vld [vmem:[%s5350_s0 + $0x110] sm:$0xff] }
  0xf8   :  { %1174 = vmatprep.mubr.bf16.mxu1 %v343_v39  ;;  %v271_v31 = vpack.c.bf16 %v68_v29, %v61_v28  ;;  %v3709_v39 = vld [vmem:[%s5351_s3 + $0xc4] ss:$8 sps:$4 sm:$0xff]   ;;  %v229_v29 = vld [vmem:[%s5350_s0 + $0x650] sm:$0xff] }
  0xfa   :  { %1501 = vmatmul.mubr.bf16.gmra.mrb[28].mxu0 %v304_v35  ;;  %v213_v35 = vld [vmem:[%s5350_s0 + $0x5d0] sm:$0xff] }
  0xfb   :  { %1510 = vmatprep.mubr.bf16.mxu0 %v312_v36  ;;  %v220_v36 = vld [vmem:[%s5350_s0 + $0x608] sm:$0xff] }
  0xff   :  { %1175 = vmatmul.mubr.bf16.gmra.mrb[52].mxu1 %v342_v45 }
 0x100   :  { %1184 = vmatprep.mubr.bf16.mxu1 %v350_v51  ;;  %v117_v51 = vld [vmem:[%s5350_s0 + $0x2d0] sm:$0xff] }
 0x101   :  { %v299_v53 = vpack.c.bf16 %v124_v52, %v117_v51 }
 0x102   :  { %1511 = vmatmul.mubr.bf16.gmra.mrb[32].mxu0 %v311_v47  ;;  %v346_v47 = vpack.c.bf16 %v220_v36, %v213_v35  ;;  %v75_v35 = vld [vmem:[%s5350_s0 + $0x180] sm:$0xff]  ;;  %v82_v36 = vld [vmem:[%s5350_s0 + $0x1b8] sm:$0xff] }
 0x103   :  { %1520 = vmatprep.mubr.bf16.mxu0 %v319_v48  ;;  %v354_v48 = vpack.c.bf16 %v235_v44, %v228_v43  ;;  %v278_v38 = vpack.c.bf16 %v82_v36, %v75_v35  ;;  %v96_v43 = vld [vmem:[%s5350_s0 + $0x228] sm:$0xff]  ;;  %v3710_v44 = vld [vmem:[%s5351_s3 + $0xd0] ss:$8 sps:$4 sm:$0xff]   ;;  %v243_v36 = vld [vmem:[%s5350_s0 + $0x6c0] sm:$0xff] }
 0x104   :  { %v285_v45 = vpack.c.bf16 %v96_v43, %v89_v42 }
 0x107   :  { %1185 = vmatmul.mubr.bf16.gmra.mrb[56].mxu1 %v349_v57  ;;  %v145_v57 = vld [vmem:[%s5350_s0 + $0x3b0] sm:$0xff] }
 0x108   :  { %1194 = vmatprep.mubr.bf16.mxu1 %v357_v1  ;;  %v327_v1 = vpack.c.bf16 %v180_v0, %v173_v63 }
 0x10a   :  { %1521 = vmatmul.mubr.bf16.gmra.mrb[36].mxu0 %v318_v59  ;;  %v242_v59 = vld [vmem:[%s5350_s0 + $0x6b8] sm:$0xff] }
 0x10b   :  { %1530 = vmatprep.mubr.bf16.mxu0 %v326_v60  ;;  %v249_v60 = vld [vmem:[%s5350_s0 + $0x6f0] sm:$0xff] }
 0x10c   :  { %v361_v62 = vpack.c.bf16 %v249_v60, %v242_v59  ;;  %v313_v59 = vpack.c.bf16 %v152_v58, %v145_v57  ;;  %v159_v60 = vld [vmem:[%s5350_s0 + $0x420] sm:$0xff] }
 0x112   :  { %1531 = vmatmul.mubr.bf16.gmra.mrb[40].mxu0 %v325_v7  ;;  %v356_v7 = vpack.c.bf16 %v244_v3, %v237_v2 }
 0x113   :  { %1540 = vmatprep.mubr.bf16.mxu0 %v333_v8  ;;  %v3682_v8 = vld [vmem:[%s5351_s3 + $0x34] ss:$8 sps:$4 sm:$0xff]  }
 0x114   :  { %1195 = vmatmul.mubr.bf16.gmra.mrb[60].mxu1 %v356_v7  ;;  %2090 = vmatprep.subr.bf16.mxu1 %v3682_v8  ;;  %v334_v8 = vpack.c.bf16 %v194_v6, %v187_v5 }
 0x115   :  { %2091 = vmatpush1.bf16.msra.mxu1 %v3680_v4 }
 0x116   :  { %2092 = vmatprep.subr.bf16.mxu1 %v3685_v11  ;;  %v3718_v11 = vld [vmem:[%s5351_s3 + $0xf4] ss:$8 sps:$4 sm:$0xff]  }
 0x119   :  { %2093 = vmatpush1.bf16.msra.mxu1 %v3683_v10 }
 0x11a   :  { %1541 = vmatmul.mubr.bf16.gmra.mrb[44].mxu0 %v332_v19  ;;  %2094 = vmatprep.subr.bf16.mxu1 %v3688_v15  ;;  %v3689_v19 = vld [vmem:[%s5351_s3 + $0x60] ss:$8 sps:$4 sm:$0xff]  }
 0x11b   :  { %1550 = vmatprep.mubr.bf16.mxu0 %v340_v20  ;;  %v3694_v20 = vld [vmem:[%s5351_s3 + $0x74] ss:$8 sps:$4 sm:$0xff]   ;;  %v208_v15 = vld [vmem:[%s5350_s0 + $0x5a8] sm:$0xff] }
 0x11d   :  { %2095 = vmatpush1.bf16.msra.mxu1 %v3686_v16  ;;  %v3716_v16 = vld [vmem:[%s5351_s3 + $0xf0] ss:$8 sps:$4 sm:$0xff]  }
 0x11e   :  { %2096 = vmatprep.subr.bf16.mxu1 %v3691_v18  ;;  %v341_v18 = vpack.c.bf16 %v208_v15, %v201_v14 }
 0x121   :  { %2097 = vmatpush1.bf16.msra.mxu1 %v3689_v19 }
 0x122   :  { %1551 = vmatmul.mubr.bf16.gmra.mrb[48].mxu0 %v339_v33  ;;  %2098 = vmatprep.subr.bf16.mxu1 %v3694_v20  ;;  %v3701_v33 = vld [vmem:[%s5351_s3 + $0xa0] ss:$8 sps:$4 sm:$0xff]  }
 0x123   :  { %1560 = vmatprep.mubr.bf16.mxu0 %v347_v34  ;;  %v3706_v34 = vld [vmem:[%s5351_s3 + $0xb4] ss:$8 sps:$4 sm:$0xff]  }
 0x125   :  { %2099 = vmatpush1.bf16.msra.mxu1 %v3692_v23  ;;  %v222_v23 = vld [vmem:[%s5350_s0 + $0x618] sm:$0xff] }
 0x126   :  { %2100 = vmatprep.subr.bf16.mxu1 %v3697_v25  ;;  %v348_v25 = vpack.c.bf16 %v222_v23, %v215_v22  ;;  %v463_v23 = vlaneseq }
 0x129   :  { %2101 = vmatpush1.bf16.msra.mxu1 %v3695_v26 }
 0x12a   :  { %1561 = vmatmul.mubr.bf16.gmra.mrb[52].mxu0 %v346_v47  ;;  %2102 = vmatprep.subr.bf16.mxu1 %v3700_v27  ;;  %v3713_v47 = vld [vmem:[%s5351_s3 + $0xe0] ss:$8 sps:$4 sm:$0xff]  }
 0x12b   :  { %1570 = vmatprep.mubr.bf16.mxu0 %v354_v48  ;;  %v103_v48 = vld [vmem:[%s5350_s0 + $0x260] sm:$0xff] }
 0x12c   :  { %v292_v50 = vpack.c.bf16 %v110_v49, %v103_v48 }
 0x12d   :  { %2103 = vmatpush1.bf16.msra.mxu1 %v3698_v30  ;;  %v236_v30 = vld [vmem:[%s5350_s0 + $0x688] sm:$0xff] }
 0x12e   :  { %2104 = vmatprep.subr.bf16.mxu1 %v3703_v32  ;;  %v355_v32 = vpack.c.bf16 %v236_v30, %v229_v29  ;;  %v3719_v30 = vld [vmem:[%s5352_s5 + $0x40] sm:$0xff]  }
 0x131   :  { %2105 = vmatpush1.bf16.msra.mxu1 %v3701_v33 }
 0x132   :  { %1571 = vmatmul.mubr.bf16.gmra.mrb[56].mxu0 %v353_v61  ;;  %2106 = vmatprep.subr.bf16.mxu1 %v3706_v34  ;;  %v166_v61 = vld [vmem:[%s5350_s0 + $0x458] sm:$0xff] }
 0x133   :  { %1580 = vmatprep.mubr.bf16.mxu0 %v361_v62  ;;  %v320_v62 = vpack.c.bf16 %v166_v61, %v159_v60 }
 0x135   :  { %2107 = vmatpush1.bf16.msra.mxu1 %v3704_v37  ;;  %v250_v37 = vld [vmem:[%s5350_s0 + $0x6f8] sm:$0xff] }
 0x136   :  { %2108 = vmatprep.subr.bf16.mxu1 %v3709_v39  ;;  %v362_v39 = vpack.c.bf16 %v250_v37, %v243_v36  ;;  %v4993_v37 = vshrl.u32 %v463_v23, 7 }
 0x138   :  { %5375 = vst [vmem:[#allocation16_spill] sm:$0xff] %v4993_v37 }
 0x139   :  { %2109 = vmatpush1.bf16.msra.mxu1 %v3707_v40 }
 0x13a   :  { %1581 = vmatmul.mubr.bf16.gmra.mrb[60].mxu0 %v360_v9  ;;  %2110 = vmatprep.subr.bf16.mxu1 %v3712_v41 }
 0x13b   :  { %1623 = vmatprep.mubr.bf16.mxu0 %v3735_v12 }
 0x13d   :  { %2111 = vmatpush1.bf16.msra.mxu1 %v3710_v44 }
 0x13e   :  { %2112 = vmatprep.subr.bf16.mxu1 %v3715_v46 }
 0x141   :  { %2113 = vmatpush1.bf16.msra.mxu1 %v3713_v47 }
 0x142   :  { %2931 = vmatmul.mubr.msk.bf16.vlgmr.msra.gmra.mrb[0].mxu0 %vm963_vm0, %v257_v17  ;;  %2114 = vmatprep.subr.bf16.mxu1 %v3718_v11 }
 0x143   :  { %1633 = vmatprep.mubr.bf16.mxu0 %v3735_v12 }
 0x145   :  { %2115 = vmatpush1.bf16.msra.mxu1 %v3716_v16 }
 0x146   :  { %3155 = vmatprep.subr.bf16.mxu1 %v3719_v30 }
 0x14a   :  { %2932 = vmatmul.mubr.msk.bf16.gmra.mrb[4].mxu0 %vm963_vm0, %v264_v24 }
 0x14b   :  { %1643 = vmatprep.mubr.bf16.mxu0 %v3735_v12 }
 0x152   :  { %2933 = vmatmul.mubr.msk.bf16.gmra.mrb[8].mxu0 %vm963_vm0, %v271_v31 }
 0x153   :  { %1653 = vmatprep.mubr.bf16.mxu0 %v3735_v12 }
 0x15a   :  { %2934 = vmatmul.mubr.msk.bf16.gmra.mrb[12].mxu0 %vm963_vm0, %v278_v38 }
 0x15b   :  { %1663 = vmatprep.mubr.bf16.mxu0 %v3735_v12 }
 0x162   :  { %2935 = vmatmul.mubr.msk.bf16.gmra.mrb[16].mxu0 %vm963_vm0, %v285_v45  ;;  %v4823_v2 = vpop.f32.mrb[0].mxu1 }
 0x163   :  { %1673 = vmatprep.mubr.bf16.mxu0 %v3735_v12  ;;  %v4825_v3 = vpop.f32.mrb[1].mxu1 }
 0x164   :  { %v4828_v4 = vpop.f32.mrb[2].mxu1 }
 0x165   :  { %v4837_v7 = vpop.f32.mrb[3].mxu1 }
 0x16a   :  { %2936 = vmatmul.mubr.msk.bf16.gmra.mrb[20].mxu0 %vm963_vm0, %v292_v50  ;;  %v4839_v9 = vpop.f32.mrb[4].mxu1 }
 0x16b   :  { %1683 = vmatprep.mubr.bf16.mxu0 %v3735_v12  ;;  %v4841_v10 = vpop.f32.mrb[5].mxu1 }
 0x16c   :  { %v4847_v13 = vpop.f32.mrb[6].mxu1 }
 0x16d   :  { %v4859_v17 = vpop.f32.mrb[7].mxu1 }
 0x172   :  { %2937 = vmatmul.mubr.msk.bf16.gmra.mrb[24].mxu0 %vm963_vm0, %v299_v53 }
 0x173   :  { %1693 = vmatprep.mubr.bf16.mxu0 %v3735_v12 }
 0x178   :  { %v4861_v19 = vpop.f32.mrb[8].mxu1 }
 0x179   :  { %v4863_v20 = vpop.f32.mrb[9].mxu1 }
 0x17a   :  { %2938 = vmatmul.mubr.msk.bf16.gmra.mrb[28].mxu0 %vm963_vm0, %v306_v56  ;;  %v4866_v21 = vpop.f32.mrb[10].mxu1 }
 0x17b   :  { %1703 = vmatprep.mubr.bf16.mxu0 %v3735_v12  ;;  %v4875_v24 = vpop.f32.mrb[11].mxu1 }
 0x180   :  { %v4877_v26 = vpop.f32.mrb[12].mxu1 }
 0x181   :  { %v4879_v27 = vpop.f32.mrb[13].mxu1 }
 0x182   :  { %2939 = vmatmul.mubr.msk.bf16.gmra.mrb[32].mxu0 %vm963_vm0, %v313_v59  ;;  %v4882_v28 = vpop.f32.mrb[14].mxu1 }
 0x183   :  { %1713 = vmatprep.mubr.bf16.mxu0 %v3735_v12  ;;  %v4891_v31 = vpop.f32.mrb[15].mxu1 }
 0x189   :  { %v4893_v33 = vpop.f32.mrb[16].mxu1 }
 0x18a   :  { %2940 = vmatmul.mubr.msk.bf16.gmra.mrb[36].mxu0 %vm963_vm0, %v320_v62  ;;  %v4895_v34 = vpop.f32.mrb[17].mxu1 }
 0x18b   :  { %1723 = vmatprep.mubr.bf16.mxu0 %v3735_v12  ;;  %v4898_v35 = vpop.f32.mrb[18].mxu1 }
 0x18c   :  { %v4907_v38 = vpop.f32.mrb[19].mxu1 }
 0x192   :  { %2941 = vmatmul.mubr.msk.bf16.gmra.mrb[40].mxu0 %vm963_vm0, %v327_v1  ;;  %v4909_v40 = vpop.f32.mrb[20].mxu1 }
 0x193   :  { %1733 = vmatprep.mubr.bf16.mxu0 %v3735_v12  ;;  %v4911_v41 = vpop.f32.mrb[21].mxu1 }
 0x194   :  { %v4914_v42 = vpop.f32.mrb[22].mxu1 }
 0x19a   :  { %2942 = vmatmul.mubr.msk.bf16.gmra.mrb[44].mxu0 %vm963_vm0, %v334_v8 }
 0x19b   :  { %1743 = vmatprep.mubr.bf16.mxu0 %v3735_v12 }
 0x1a2   :  { %2943 = vmatmul.mubr.msk.bf16.gmra.mrb[48].mxu0 %vm963_vm0, %v341_v18 }
 0x1a3   :  { %1753 = vmatprep.mubr.bf16.mxu0 %v3735_v12 }
 0x1aa   :  { %2944 = vmatmul.mubr.msk.bf16.gmra.mrb[52].mxu0 %vm963_vm0, %v348_v25 }
 0x1ab   :  { %1763 = vmatprep.mubr.bf16.mxu0 %v3735_v12 }
 0x1b2   :  { %2945 = vmatmul.mubr.msk.bf16.gmra.mrb[56].mxu0 %vm963_vm0, %v355_v32 }
 0x1b3   :  { %1773 = vmatprep.mubr.bf16.mxu0 %v3735_v12  ;;  %v4916_v12 = vpop.f32.mrb[23].mxu1 }
 0x1b4   :  { %v4918_v43 = vpop.f32.mrb[24].mxu1 }
 0x1b5   :  { %v4920_v44 = vpop.f32.mrb[25].mxu1 }
 0x1b6   :  { %v4922_v45 = vpop.f32.mrb[26].mxu1 }
 0x1b7   :  { %v4924_v46 = vpop.f32.mrb[27].mxu1 }
 0x1b8   :  { %v4926_v47 = vpop.f32.mrb[28].mxu1 }
 0x1b9   :  { %v4928_v48 = vpop.f32.mrb[29].mxu1 }
 0x1ba   :  { %2946 = vmatmul.mubr.msk.bf16.gmra.mrb[60].mxu0 %vm963_vm0, %v362_v39  ;;  %v4930_v49 = vpop.f32.mrb[30].mxu1 }
 0x1bb   :  { %v4932_v50 = vpop.f32.mrb[31].mxu1 }
 0x1bc   :  { %v4934_v51 = vpop.f32.mrb[32].mxu1 }
 0x1bd   :  { %v4936_v52 = vpop.f32.mrb[33].mxu1 }
 0x1be   :  { %v4938_v53 = vpop.f32.mrb[34].mxu1 }
 0x1bf   :  { %v4940_v54 = vpop.f32.mrb[35].mxu1 }
 0x1c0   :  { %v4942_v55 = vpop.f32.mrb[36].mxu1 }
 0x1c1   :  { %v4944_v56 = vpop.f32.mrb[37].mxu1 }
 0x1c2   :  { %v4946_v57 = vpop.f32.mrb[38].mxu1 }
 0x1c3   :  { %v4948_v58 = vpop.f32.mrb[39].mxu1 }
 0x1c4   :  { %v4950_v59 = vpop.f32.mrb[40].mxu1 }
 0x1c5   :  { %v4952_v60 = vpop.f32.mrb[41].mxu1 }
 0x1c6   :  { %v4954_v61 = vpop.f32.mrb[42].mxu1 }
 0x1c7   :  { %v4956_v62 = vpop.f32.mrb[43].mxu1 }
 0x1c8   :  { %v4958_v63 = vpop.f32.mrb[44].mxu1 }
 0x1c9   :  { %v4960_v0 = vpop.f32.mrb[45].mxu1 }
 0x1ca   :  { %v4962_v1 = vpop.f32.mrb[46].mxu1 }
 0x1cb   :  { %5361 = vst [vmem:[#allocation2_spill] sm:$0xff] %v4962_v1  ;;  %v4964_v5 = vpop.f32.mrb[47].mxu1 }
 0x1cc   :  { %5362 = vst [vmem:[#allocation3_spill] sm:$0xff] %v4964_v5  ;;  %v4966_v6 = vpop.f32.mrb[48].mxu1 }
 0x1cd   :  { %5363 = vst [vmem:[#allocation4_spill] sm:$0xff] %v4966_v6  ;;  %v4968_v8 = vpop.f32.mrb[49].mxu1 }
 0x1ce   :  { %5364 = vst [vmem:[#allocation5_spill] sm:$0xff] %v4968_v8  ;;  %v4970_v11 = vpop.f32.mrb[50].mxu1 }
 0x1cf   :  { %5365 = vst [vmem:[#allocation6_spill] sm:$0xff] %v4970_v11  ;;  %v4972_v14 = vpop.f32.mrb[51].mxu1 }
 0x1d0   :  { %5366 = vst [vmem:[#allocation7_spill] sm:$0xff] %v4972_v14 }
 0x1d2   :  { %v4974_v15 = vpop.f32.mrb[52].mxu1 }
 0x1d3   :  { %5367 = vst [vmem:[#allocation8_spill] sm:$0xff] %v4974_v15  ;;  %v4976_v16 = vpop.f32.mrb[53].mxu1 }
 0x1d4   :  { %5368 = vst [vmem:[#allocation9_spill] sm:$0xff] %v4976_v16  ;;  %v4978_v18 = vpop.f32.mrb[54].mxu1  ;;  %v5360_v16 = vsub.s32 1, %v4993_v37 }
 0x1d5   :  { %5369 = vst [vmem:[#allocation10_spill] sm:$0xff] %v4978_v18  ;;  %v4980_v22 = vpop.f32.mrb[55].mxu1 }
 0x1d6   :  { %5370 = vst [vmem:[#allocation11_spill] sm:$0xff] %v4980_v22  ;;  %v461_v22 = vld [vmem:[%s5353_s2] sm:$0x3] }
 0x1d7   :  { %v5014_v30 = vrot.slane %v461_v22, %v5360_v16 }
 0x1da   :  { %v4982_v25 = vpop.f32.mrb[56].mxu1 }
 0x1db   :  { %5371 = vst [vmem:[#allocation12_spill] sm:$0xff] %v4982_v25  ;;  %v4984_v29 = vpop.f32.mrb[57].mxu1 }
 0x1dc   :  { %5372 = vst [vmem:[#allocation13_spill] sm:$0xff] %v4984_v29  ;;  %v4989_v32 = vpop.f32.mrb[58].mxu1  ;;  %v5357_v29 = vsub.s32 0, %v4993_v37 }
 0x1dd   :  { %5373 = vst [vmem:[#allocation14_spill] sm:$0xff] %v4989_v32  ;;  %v4991_v36 = vpop.f32.mrb[59].mxu1 }
 0x1de   :  { %5374 = vst [vmem:[#allocation15_spill] sm:$0xff] %v4991_v36  ;;  %v5010_v23 = vrot.slane %v461_v22, %v5357_v29  ;;  %v1053_v29 = vadd.f32 %v4837_v7, %v5014_v30  ;;  %v3720_v7 = vld [vmem:[%s5352_s5] sm:$0xff]  }
 0x1e7   :  { %v4995_v39 = vpop.f32.mrb[60].mxu1 }
 0x1e8   :  { %5376 = vst [vmem:[#allocation17_spill] sm:$0xff] %v4995_v39  ;;  %v5000_v25 = vpop.f32.mrb[61].mxu1  ;;  %v1047_v39 = vadd.f32 %v4823_v2, %v5010_v23  ;;  %v1057_v2 = vadd.f32 %v4839_v9, %v5010_v23  ;;  %v3721_v9 = vld [vmem:[%s5352_s5 + $0x48] sm:$0xff]  }
 0x1e9   :  { %5377 = vst [vmem:[#allocation18_spill] sm:$0xff] %v5000_v25  ;;  %v5003_v18 = vpop.f32.mrb[62].mxu1  ;;  %v1049_v25 = vadd.f32 %v4825_v3, %v5014_v30 }
 0x1ea   :  { %5378 = vst [vmem:[#allocation19_spill] sm:$0xff] %v5003_v18  ;;  %v5006_v32 = vpop.f32.mrb[63].mxu1  ;;  %v1051_v18 = vadd.f32 %v4828_v4, %v5010_v23  ;;  %v1059_v4 = vadd.f32 %v4841_v10, %v5014_v30 }
 0x1eb   :  { %5379 = vst [vmem:[#allocation20_spill] sm:$0xff] %v5006_v32 }
 0x215   :  { %v1625_v36 = vpop.f32.mrb[0].mxu0 }
 0x216   :  { %v3268_v15 = vadd.f32 %v1625_v36, %v1047_v39  ;;  %v1627_v32 = vpop.f32.mrb[1].mxu0 }
 0x217   :  { %v3270_v14 = vadd.f32 %v1627_v32, %v1049_v25  ;;  %v1629_v11 = vpop.f32.mrb[2].mxu0 }
 0x218   :  { %v3272_v37 = vadd.f32 %v1629_v11, %v1051_v18  ;;  %v1631_v22 = vpop.f32.mrb[3].mxu0  ;;  %v1784_v8 = vmax.f32 %v3268_v15, 0.0  ;;  %v1061_v11 = vadd.f32 %v4847_v13, %v5010_v23  ;;  %v3722_v13 = vld [vmem:[%s5352_s5 + $0x8] sm:$0xff]  }
 0x219   :  { %v3274_v16 = vadd.f32 %v1631_v22, %v1053_v29  ;;  %v1785_v3 = vmax.f32 %v3270_v14, 0.0  ;;  %v1063_v14 = vadd.f32 %v4859_v17, %v5014_v30  ;;  %v1067_v29 = vadd.f32 %v4861_v19, %v5010_v23  ;;  %v3723_v17 = vld [vmem:[%s5352_s5 + $0x50] sm:$0xff]  }
 0x21a   :  { %v1786_v6 = vmax.f32 %v3272_v37, 0.0  ;;  %v1069_v22 = vadd.f32 %v4863_v20, %v5014_v30  ;;  %v1071_v19 = vadd.f32 %v4866_v21, %v5010_v23  ;;  %v1073_v20 = vadd.f32 %v4875_v24, %v5014_v30  ;;  %v3726_v21 = vld [vmem:[%s5352_s5 + $0x18] sm:$0xff]   ;;  %v3727_v24 = vld [vmem:[%s5352_s5 + $0x60] sm:$0xff]  }
 0x21b   :  { %v1787_v5 = vmax.f32 %v3274_v16, 0.0 }
 0x21c   :  { %v1848_v36 = vpack.c.bf16 %v1786_v6, %v1784_v8 }
 0x21d   :  { %v1849_v39 = vpack.c.bf16 %v1787_v5, %v1785_v3  ;;  %v1635_v1 = vpop.f32.mrb[4].mxu0 }
 0x21e   :  { %v3276_v15 = vadd.f32 %v1635_v1, %v1057_v2  ;;  %v1637_v18 = vpop.f32.mrb[5].mxu0 }
 0x21f   :  { %v3278_v10 = vadd.f32 %v1637_v18, %v1059_v4  ;;  %v1639_v6 = vpop.f32.mrb[6].mxu0  ;;  %2116 = vmatprep.mubr.bf16.mxu1 %v1849_v39 }
 0x220   :  { %v3280_v5 = vadd.f32 %v1639_v6, %v1061_v11  ;;  %v1641_v8 = vpop.f32.mrb[7].mxu0  ;;  %2117 = vmatmul.mubr.bf16.vlgmr.msra.gmra.mrb[64].mxu1 %v1848_v36  ;;  %v1788_v1 = vmax.f32 %v3276_v15, 0.0  ;;  %v3724_v36 = vld [vmem:[%s5352_s5 + $0x10] sm:$0xff]   ;;  %v3725_v11 = vld [vmem:[%s5352_s5 + $0x58] sm:$0xff]  }
 0x221   :  { %v3282_v16 = vadd.f32 %v1641_v8, %v1063_v14  ;;  %3156 = vmatpush3.bf16.msra.mxu1 %v3720_v7  ;;  %v1789_v32 = vmax.f32 %v3278_v10, 0.0  ;;  %v1077_v8 = vadd.f32 %v4877_v26, %v5010_v23  ;;  %v1081_v26 = vadd.f32 %v4882_v28, %v5010_v23  ;;  %v3730_v28 = vld [vmem:[%s5352_s5 + $0x28] sm:$0xff]  }
 0x222   :  { %v1790_v25 = vmax.f32 %v3280_v5, 0.0  ;;  %3157 = vmatprep.subr.bf16.mxu1 %v3721_v9 }
 0x223   :  { %v1791_v37 = vmax.f32 %v3282_v16, 0.0 }
 0x224   :  { %v1850_v2 = vpack.c.bf16 %v1790_v25, %v1788_v1  ;;  %v1079_v1 = vadd.f32 %v4879_v27, %v5014_v30  ;;  %v1083_v27 = vadd.f32 %v4891_v31, %v5014_v30  ;;  %v3731_v31 = vld [vmem:[%s5352_s5 + $0x70] sm:$0xff]  }
 0x225   :  { %v1851_v3 = vpack.c.bf16 %v1791_v37, %v1789_v32  ;;  %v1645_v4 = vpop.f32.mrb[8].mxu0  ;;  %3158 = vmatpush3.bf16.msra.mxu1 %v3722_v13  ;;  %v3728_v32 = vld [vmem:[%s5352_s5 + $0x20] sm:$0xff]  }
 0x226   :  { %v3284_v39 = vadd.f32 %v1645_v4, %v1067_v29  ;;  %v1647_v7 = vpop.f32.mrb[9].mxu0  ;;  %3159 = vmatprep.subr.bf16.mxu1 %v3723_v17 }
 0x227   :  { %v3286_v15 = vadd.f32 %v1647_v7, %v1069_v22  ;;  %v1649_v18 = vpop.f32.mrb[10].mxu0  ;;  %2126 = vmatprep.mubr.bf16.mxu1 %v1851_v3 }
 0x228   :  { %v3288_v9 = vadd.f32 %v1649_v18, %v1071_v19  ;;  %v1651_v14 = vpop.f32.mrb[11].mxu0  ;;  %2127 = vmatmul.mubr.bf16.gmra.mrb[68].mxu1 %v1850_v2  ;;  %v1792_v6 = vmax.f32 %v3284_v39, 0.0  ;;  %v3729_v2 = vld [vmem:[%s5352_s5 + $0x68] sm:$0xff]  }
 0x229   :  { %v3290_v10 = vadd.f32 %v1651_v14, %v1073_v20  ;;  %3160 = vmatpush3.bf16.msra.mxu1 %v3724_v36  ;;  %v1793_v16 = vmax.f32 %v3286_v15, 0.0  ;;  %v1087_v20 = vadd.f32 %v4893_v33, %v5010_v23  ;;  %v1091_v33 = vadd.f32 %v4898_v35, %v5010_v23  ;;  %v3734_v35 = vld [vmem:[%s5352_s5 + $0x38] sm:$0xff]  }
 0x22a   :  { %v1794_v5 = vmax.f32 %v3288_v9, 0.0  ;;  %3161 = vmatprep.subr.bf16.mxu1 %v3725_v11  ;;  %v1089_v9 = vadd.f32 %v4895_v34, %v5014_v30  ;;  %v1093_v34 = vadd.f32 %v4907_v38, %v5014_v30 }
 0x22b   :  { %v1795_v13 = vmax.f32 %v3290_v10, 0.0 }
 0x22c   :  { %v1852_v25 = vpack.c.bf16 %v1794_v5, %v1792_v6  ;;  %v3732_v6 = vld [vmem:[%s5352_s5 + $0x30] sm:$0xff]  }
 0x22d   :  { %v1853_v29 = vpack.c.bf16 %v1795_v13, %v1793_v16  ;;  %v1655_v17 = vpop.f32.mrb[12].mxu0  ;;  %3162 = vmatpush3.bf16.msra.mxu1 %v3726_v21 }
 0x22e   :  { %v3292_v37 = vadd.f32 %v1655_v17, %v1077_v8  ;;  %v1657_v22 = vpop.f32.mrb[13].mxu0  ;;  %3163 = vmatprep.subr.bf16.mxu1 %v3727_v24  ;;  %v3733_v24 = vld [vmem:[%s5352_s5 + $0x78] sm:$0xff]  }
 0x22f   :  { %v3294_v3 = vadd.f32 %v1657_v22, %v1079_v1  ;;  %v1659_v4 = vpop.f32.mrb[14].mxu0  ;;  %2136 = vmatprep.mubr.bf16.mxu1 %v1853_v29  ;;  %v1099_v22 = vadd.f32 %v4911_v41, %v5014_v30 }
 0x230   :  { %v3296_v36 = vadd.f32 %v1659_v4, %v1081_v26  ;;  %v1661_v19 = vpop.f32.mrb[15].mxu0  ;;  %2137 = vmatmul.mubr.bf16.gmra.mrb[72].mxu1 %v1852_v25  ;;  %v1796_v7 = vmax.f32 %v3292_v37, 0.0  ;;  %v1097_v26 = vadd.f32 %v4909_v40, %v5010_v23  ;;  %v1101_v4 = vadd.f32 %v4914_v42, %v5010_v23 }
 0x231   :  { %v3298_v39 = vadd.f32 %v1661_v19, %v1083_v27  ;;  %3164 = vmatpush3.bf16.msra.mxu1 %v3728_v32  ;;  %v1797_v15 = vmax.f32 %v3294_v3, 0.0  ;;  %v1109_v42 = vadd.f32 %v4920_v44, %v5014_v30 }
 0x232   :  { %v1798_v11 = vmax.f32 %v3296_v36, 0.0  ;;  %3165 = vmatprep.subr.bf16.mxu1 %v3729_v2 }
 0x233   :  { %v1799_v18 = vmax.f32 %v3298_v39, 0.0  ;;  %v1103_v39 = vadd.f32 %v4916_v12, %v5014_v30 }
 0x234   :  { %v1854_v14 = vpack.c.bf16 %v1798_v11, %v1796_v7 }
 0x235   :  { %v1855_v10 = vpack.c.bf16 %v1799_v18, %v1797_v15  ;;  %v1665_v21 = vpop.f32.mrb[16].mxu0  ;;  %3166 = vmatpush3.bf16.msra.mxu1 %v3730_v28  ;;  %v1107_v15 = vadd.f32 %v4918_v43, %v5010_v23 }
 0x236   :  { %v3300_v5 = vadd.f32 %v1665_v21, %v1087_v20  ;;  %v1667_v8 = vpop.f32.mrb[17].mxu0  ;;  %3167 = vmatprep.subr.bf16.mxu1 %v3731_v31  ;;  %v1111_v21 = vadd.f32 %v4922_v45, %v5010_v23  ;;  %v1119_v45 = vadd.f32 %v4928_v48, %v5014_v30 }
 0x237   :  { %v3302_v16 = vadd.f32 %v1667_v8, %v1089_v9  ;;  %v1669_v13 = vpop.f32.mrb[18].mxu0  ;;  %2146 = vmatprep.mubr.bf16.mxu1 %v1855_v10 }
 0x238   :  { %v3304_v1 = vadd.f32 %v1669_v13, %v1091_v33  ;;  %v1671_v25 = vpop.f32.mrb[19].mxu0  ;;  %2147 = vmatmul.mubr.bf16.gmra.mrb[76].mxu1 %v1854_v14  ;;  %v1800_v17 = vmax.f32 %v3300_v5, 0.0  ;;  %v1113_v5 = vadd.f32 %v4924_v46, %v5014_v30 }
 0x239   :  { %v3306_v29 = vadd.f32 %v1671_v25, %v1093_v34  ;;  %3168 = vmatpush3.bf16.msra.mxu1 %v3732_v6  ;;  %v1801_v37 = vmax.f32 %v3302_v16, 0.0 }
 0x23a   :  { %v1802_v32 = vmax.f32 %v3304_v1, 0.0  ;;  %3169 = vmatprep.subr.bf16.mxu1 %v3733_v24  ;;  %v1117_v1 = vadd.f32 %v4926_v47, %v5010_v23 }
 0x23b   :  { %v1803_v38 = vmax.f32 %v3306_v29, 0.0 }
 0x23c   :  { %v1856_v2 = vpack.c.bf16 %v1802_v32, %v1800_v17  ;;  %v1121_v32 = vadd.f32 %v4930_v49, %v5010_v23  ;;  %v1129_v49 = vadd.f32 %v4936_v52, %v5014_v30 }
 0x23d   :  { %v1857_v27 = vpack.c.bf16 %v1803_v38, %v1801_v37  ;;  %v1675_v3 = vpop.f32.mrb[20].mxu0  ;;  %3170 = vmatpush3.bf16.msra.mxu1 %v3734_v35  ;;  %v1123_v38 = vadd.f32 %v4932_v50, %v5014_v30 }
 0x23e   :  { %v3308_v36 = vadd.f32 %v1675_v3, %v1097_v26  ;;  %v1677_v19 = vpop.f32.mrb[21].mxu0 }
 0x23f   :  { %v3310_v28 = vadd.f32 %v1677_v19, %v1099_v22  ;;  %v1679_v40 = vpop.f32.mrb[22].mxu0  ;;  %2156 = vmatprep.mubr.bf16.mxu1 %v1857_v27 }
 0x240   :  { %v3312_v7 = vadd.f32 %v1679_v40, %v1101_v4  ;;  %v1681_v11 = vpop.f32.mrb[23].mxu0  ;;  %2157 = vmatmul.mubr.bf16.gmra.mrb[80].mxu1 %v1856_v2  ;;  %v1804_v41 = vmax.f32 %v3308_v36, 0.0  ;;  %v1127_v36 = vadd.f32 %v4934_v51, %v5010_v23 }
 0x241   :  { %v3314_v20 = vadd.f32 %v1681_v11, %v1103_v39  ;;  %v1805_v18 = vmax.f32 %v3310_v28, 0.0 }
 0x242   :  { %v1806_v31 = vmax.f32 %v3312_v7, 0.0  ;;  %v1131_v7 = vadd.f32 %v4938_v53, %v5010_v23  ;;  %v1139_v53 = vadd.f32 %v4944_v56, %v5014_v30 }
 0x243   :  { %v1807_v9 = vmax.f32 %v3314_v20, 0.0 }
 0x244   :  { %v1858_v14 = vpack.c.bf16 %v1806_v31, %v1804_v41  ;;  %v1133_v41 = vadd.f32 %v4940_v54, %v5014_v30 }
 0x245   :  { %v1859_v10 = vpack.c.bf16 %v1807_v9, %v1805_v18  ;;  %v1685_v12 = vpop.f32.mrb[24].mxu0 }
 0x246   :  { %v3316_v6 = vadd.f32 %v1685_v12, %v1107_v15  ;;  %v1687_v33 = vpop.f32.mrb[25].mxu0 }
 0x247   :  { %v3318_v8 = vadd.f32 %v1687_v33, %v1109_v42  ;;  %v1689_v24 = vpop.f32.mrb[26].mxu0  ;;  %2166 = vmatprep.mubr.bf16.mxu1 %v1859_v10  ;;  %v1141_v33 = vadd.f32 %v4946_v57, %v5010_v23  ;;  %v1149_v57 = vadd.f32 %v4952_v60, %v5014_v30 }
 0x248   :  { %v3320_v43 = vadd.f32 %v1689_v24, %v1111_v21  ;;  %v1691_v34 = vpop.f32.mrb[27].mxu0  ;;  %2167 = vmatmul.mubr.bf16.gmra.mrb[84].mxu1 %v1858_v14  ;;  %v1808_v13 = vmax.f32 %v3316_v6, 0.0  ;;  %v1137_v14 = vadd.f32 %v4942_v55, %v5010_v23  ;;  %v1143_v24 = vadd.f32 %v4948_v58, %v5014_v30 }
 0x249   :  { %v3322_v16 = vadd.f32 %v1691_v34, %v1113_v5  ;;  %v1809_v25 = vmax.f32 %v3318_v8, 0.0 }
 0x24a   :  { %v1810_v44 = vmax.f32 %v3320_v43, 0.0 }
 0x24b   :  { %v1811_v29 = vmax.f32 %v3322_v16, 0.0 }
 0x24c   :  { %v1860_v35 = vpack.c.bf16 %v1810_v44, %v1808_v13 }
 0x24d   :  { %v1861_v17 = vpack.c.bf16 %v1811_v29, %v1809_v25  ;;  %v1695_v46 = vpop.f32.mrb[28].mxu0 }
 0x24e   :  { %v3324_v26 = vadd.f32 %v1695_v46, %v1117_v1  ;;  %v1697_v37 = vpop.f32.mrb[29].mxu0  ;;  %v1147_v1 = vadd.f32 %v4950_v59, %v5010_v23 }
 0x24f   :  { %v3326_v22 = vadd.f32 %v1697_v37, %v1119_v45  ;;  %v1699_v2 = vpop.f32.mrb[30].mxu0  ;;  %2176 = vmatprep.mubr.bf16.mxu1 %v1861_v17  ;;  %v1151_v17 = vadd.f32 %v4954_v61, %v5010_v23  ;;  %v1159_v61 = vadd.f32 %v4960_v0, %v5014_v30 }
 0x250   :  { %v3328_v47 = vadd.f32 %v1699_v2, %v1121_v32  ;;  %v1701_v27 = vpop.f32.mrb[31].mxu0  ;;  %2177 = vmatmul.mubr.bf16.gmra.mrb[88].mxu1 %v1860_v35  ;;  %v1812_v4 = vmax.f32 %v3324_v26, 0.0  ;;  %v1153_v26 = vadd.f32 %v4956_v62, %v5014_v30 }
 0x251   :  { %v3330_v3 = vadd.f32 %v1701_v27, %v1123_v38  ;;  %v1813_v19 = vmax.f32 %v3326_v22, 0.0  ;;  %v1157_v27 = vadd.f32 %v4958_v63, %v5010_v23 }
 0x252   :  { %v1814_v48 = vmax.f32 %v3328_v47, 0.0 }
 0x253   :  { %v1815_v39 = vmax.f32 %v3330_v3, 0.0 }
 0x254   :  { %v1862_v28 = vpack.c.bf16 %v1814_v48, %v1812_v4 }
 0x255   :  { %v1863_v40 = vpack.c.bf16 %v1815_v39, %v1813_v19  ;;  %v1705_v50 = vpop.f32.mrb[32].mxu0  ;;  %v5380_v19 = vld [vmem:[#allocation2_spill] sm:$0xff] }
 0x256   :  { %v3332_v11 = vadd.f32 %v1705_v50, %v1127_v36  ;;  %v1707_v20 = vpop.f32.mrb[33].mxu0  ;;  %v1161_v39 = vadd.f32 %v5380_v19, %v5010_v23 }
 0x257   :  { %v3334_v31 = vadd.f32 %v1707_v20, %v1129_v49  ;;  %v1709_v15 = vpop.f32.mrb[34].mxu0  ;;  %2186 = vmatprep.mubr.bf16.mxu1 %v1863_v40  ;;  %v5381_v40 = vld [vmem:[#allocation3_spill] sm:$0xff] }
 0x258   :  { %v3336_v51 = vadd.f32 %v1709_v15, %v1131_v7  ;;  %v1711_v18 = vpop.f32.mrb[35].mxu0  ;;  %2187 = vmatmul.mubr.bf16.gmra.mrb[92].mxu1 %v1862_v28  ;;  %v1816_v42 = vmax.f32 %v3332_v11, 0.0  ;;  %v1163_v50 = vadd.f32 %v5381_v40, %v5014_v30  ;;  %v5382_v15 = vld [vmem:[#allocation4_spill] sm:$0xff]  ;;  %v5392_v40 = vld [vmem:[#allocation14_spill] sm:$0xff] }
 0x259   :  { %v3338_v9 = vadd.f32 %v1711_v18, %v1133_v41  ;;  %v1817_v10 = vmax.f32 %v3334_v31, 0.0 }
 0x25a   :  { %v1818_v52 = vmax.f32 %v3336_v51, 0.0  ;;  %v1167_v51 = vadd.f32 %v5382_v15, %v5010_v23 }
 0x25b   :  { %v1819_v12 = vmax.f32 %v3338_v9, 0.0 }
 0x25c   :  { %v1864_v21 = vpack.c.bf16 %v1818_v52, %v1816_v42  ;;  %v5383_v42 = vld [vmem:[#allocation5_spill] sm:$0xff] }
 0x25d   :  { %v1865_v6 = vpack.c.bf16 %v1819_v12, %v1817_v10  ;;  %v1715_v54 = vpop.f32.mrb[36].mxu0  ;;  %v1169_v52 = vadd.f32 %v5383_v42, %v5014_v30  ;;  %v5394_v42 = vld [vmem:[#allocation17_spill] sm:$0xff] }
 0x25e   :  { %v3340_v5 = vadd.f32 %v1715_v54, %v1137_v14  ;;  %v1717_v8 = vpop.f32.mrb[37].mxu0 }
 0x25f   :  { %v3342_v43 = vadd.f32 %v1717_v8, %v1139_v53  ;;  %v1719_v34 = vpop.f32.mrb[38].mxu0  ;;  %2196 = vmatprep.mubr.bf16.mxu1 %v1865_v6  ;;  %v5384_v53 = vld [vmem:[#allocation6_spill] sm:$0xff] }
 0x260   :  { %v3344_v55 = vadd.f32 %v1719_v34, %v1141_v33  ;;  %v1721_v16 = vpop.f32.mrb[39].mxu0  ;;  %2197 = vmatmul.mubr.bf16.gmra.mrb[96].mxu1 %v1864_v21  ;;  %v1820_v44 = vmax.f32 %v3340_v5, 0.0  ;;  %v1171_v21 = vadd.f32 %v5384_v53, %v5010_v23  ;;  %v5385_v33 = vld [vmem:[#allocation7_spill] sm:$0xff] }
 0x261   :  { %v3346_v13 = vadd.f32 %v1721_v16, %v1143_v24  ;;  %v1821_v25 = vmax.f32 %v3342_v43, 0.0  ;;  %v1173_v5 = vadd.f32 %v5385_v33, %v5014_v30  ;;  %v5396_v33 = vld [vmem:[#allocation19_spill] sm:$0xff] }
 0x262   :  { %v1822_v56 = vmax.f32 %v3344_v55, 0.0 }
 0x263   :  { %v1823_v29 = vmax.f32 %v3346_v13, 0.0 }
 0x264   :  { %v1866_v45 = vpack.c.bf16 %v1822_v56, %v1820_v44  ;;  %v5386_v44 = vld [vmem:[#allocation8_spill] sm:$0xff] }
 0x265   :  { %v1867_v35 = vpack.c.bf16 %v1823_v29, %v1821_v25  ;;  %v1725_v58 = vpop.f32.mrb[40].mxu0  ;;  %v1177_v56 = vadd.f32 %v5386_v44, %v5010_v23  ;;  %v5387_v29 = vld [vmem:[#allocation9_spill] sm:$0xff] }
 0x266   :  { %v3348_v46 = vadd.f32 %v1725_v58, %v1147_v1  ;;  %v1727_v32 = vpop.f32.mrb[41].mxu0 }
 0x267   :  { %v3350_v37 = vadd.f32 %v1727_v32, %v1149_v57  ;;  %v1729_v38 = vpop.f32.mrb[42].mxu0  ;;  %2206 = vmatprep.mubr.bf16.mxu1 %v1867_v35  ;;  %v1179_v57 = vadd.f32 %v5387_v29, %v5014_v30 }
 0x268   :  { %v3352_v59 = vadd.f32 %v1729_v38, %v1151_v17  ;;  %v1731_v22 = vpop.f32.mrb[43].mxu0  ;;  %2207 = vmatmul.mubr.bf16.gmra.mrb[100].mxu1 %v1866_v45  ;;  %v1824_v47 = vmax.f32 %v3348_v46, 0.0  ;;  %v5388_v17 = vld [vmem:[#allocation10_spill] sm:$0xff] }
 0x269   :  { %v3354_v2 = vadd.f32 %v1731_v22, %v1153_v26  ;;  %v1825_v3 = vmax.f32 %v3350_v37, 0.0  ;;  %v1181_v46 = vadd.f32 %v5388_v17, %v5010_v23  ;;  %v5389_v37 = vld [vmem:[#allocation11_spill] sm:$0xff] }
 0x26a   :  { %v1826_v60 = vmax.f32 %v3352_v59, 0.0  ;;  %v1183_v38 = vadd.f32 %v5389_v37, %v5014_v30 }
 0x26b   :  { %v1827_v4 = vmax.f32 %v3354_v2, 0.0 }
 0x26c   :  { %v1868_v48 = vpack.c.bf16 %v1826_v60, %v1824_v47 }
 0x26d   :  { %v1869_v36 = vpack.c.bf16 %v1827_v4, %v1825_v3  ;;  %v1735_v62 = vpop.f32.mrb[44].mxu0  ;;  %v5390_v4 = vld [vmem:[#allocation12_spill] sm:$0xff] }
 0x26e   :  { %v3356_v49 = vadd.f32 %v1735_v62, %v1157_v27  ;;  %v1737_v28 = vpop.f32.mrb[45].mxu0  ;;  %v5391_v62 = vld [vmem:[#allocation13_spill] sm:$0xff] }
 0x26f   :  { %v3358_v7 = vadd.f32 %v1737_v28, %v1159_v61  ;;  %v1739_v11 = vpop.f32.mrb[46].mxu0  ;;  %2216 = vmatprep.mubr.bf16.mxu1 %v1869_v36  ;;  %v1187_v61 = vadd.f32 %v5390_v4, %v5010_v23  ;;  %v1189_v19 = vadd.f32 %v5391_v62, %v5014_v30 }
 0x270   :  { %v3360_v63 = vadd.f32 %v1739_v11, %v1161_v39  ;;  %v1741_v20 = vpop.f32.mrb[47].mxu0  ;;  %2217 = vmatmul.mubr.bf16.gmra.mrb[104].mxu1 %v1868_v48  ;;  %v1828_v31 = vmax.f32 %v3356_v49, 0.0 }
 0x271   :  { %v3362_v41 = vadd.f32 %v1741_v20, %v1163_v50  ;;  %v1829_v18 = vmax.f32 %v3358_v7, 0.0  ;;  %v1191_v50 = vadd.f32 %v5392_v40, %v5010_v23 }
 0x272   :  { %v1830_v0 = vmax.f32 %v3360_v63, 0.0  ;;  %v5393_v63 = vld [vmem:[#allocation15_spill] sm:$0xff] }
 0x273   :  { %v1831_v9 = vmax.f32 %v3362_v41, 0.0  ;;  %v1193_v20 = vadd.f32 %v5393_v63, %v5014_v30 }
 0x274   :  { %v1870_v14 = vpack.c.bf16 %v1830_v0, %v1828_v31 }
 0x275   :  { %v1871_v10 = vpack.c.bf16 %v1831_v9, %v1829_v18  ;;  %v1745_v12 = vpop.f32.mrb[48].mxu0 }
 0x276   :  { %v3364_v6 = vadd.f32 %v1745_v12, %v1167_v51  ;;  %v1747_v54 = vpop.f32.mrb[49].mxu0  ;;  %v5395_v12 = vld [vmem:[#allocation18_spill] sm:$0xff] }
 0x277   :  { %v3366_v8 = vadd.f32 %v1747_v54, %v1169_v52  ;;  %v1749_v24 = vpop.f32.mrb[50].mxu0  ;;  %2226 = vmatprep.mubr.bf16.mxu1 %v1871_v10  ;;  %v1197_v52 = vadd.f32 %v5394_v42, %v5010_v23  ;;  %v1199_v53 = vadd.f32 %v5395_v12, %v5014_v30 }
 0x278   :  { %v3368_v43 = vadd.f32 %v1749_v24, %v1171_v21  ;;  %v1751_v34 = vpop.f32.mrb[51].mxu0  ;;  %2227 = vmatmul.mubr.bf16.gmra.mrb[108].mxu1 %v1870_v14  ;;  %v1832_v16 = vmax.f32 %v3364_v6, 0.0 }
 0x279   :  { %v3370_v55 = vadd.f32 %v1751_v34, %v1173_v5  ;;  %v1833_v1 = vmax.f32 %v3366_v8, 0.0  ;;  %v1201_v5 = vadd.f32 %v5396_v33, %v5010_v23  ;;  %v1912_v23 = vld [vmem:[%s5354_s4] sm:$0x3] }
 0x27a   :  { %v1834_v13 = vmax.f32 %v3368_v43, 0.0  ;;  %v5397_v43 = vld [vmem:[#allocation20_spill] sm:$0xff] }
 0x27b   :  { %v1835_v25 = vmax.f32 %v3370_v55, 0.0  ;;  %v1203_v34 = vadd.f32 %v5397_v43, %v5014_v30  ;;  %v5398_v30 = vld [vmem:[#allocation16_spill] sm:$0xff] }
 0x27c   :  { %v1872_v45 = vpack.c.bf16 %v1834_v13, %v1832_v16 }
 0x27d   :  { %v1873_v35 = vpack.c.bf16 %v1835_v25, %v1833_v1  ;;  %v1755_v58 = vpop.f32.mrb[52].mxu0 }
 0x27e   :  { %v3372_v32 = vadd.f32 %v1755_v58, %v1177_v56  ;;  %v1757_v26 = vpop.f32.mrb[53].mxu0  ;;  %v5399_v58 = vsub.s32 0, %v5398_v30 }
 0x27f   :  { %v3374_v59 = vadd.f32 %v1757_v26, %v1179_v57  ;;  %v1759_v22 = vpop.f32.mrb[54].mxu0  ;;  %2236 = vmatprep.mubr.bf16.mxu1 %v1873_v35 }
 0x280   :  { %v3376_v2 = vadd.f32 %v1759_v22, %v1181_v46  ;;  %v1761_v47 = vpop.f32.mrb[55].mxu0  ;;  %2237 = vmatmul.mubr.bf16.gmra.mrb[112].mxu1 %v1872_v45  ;;  %v1836_v27 = vmax.f32 %v3372_v32, 0.0  ;;  %v5194_v17 = vrot.slane %v1912_v23, %v5399_v58  ;;  %v5400_v46 = vsub.s32 1, %v5398_v30 }
 0x281   :  { %v3378_v60 = vadd.f32 %v1761_v47, %v1183_v38  ;;  %v1837_v48 = vmax.f32 %v3374_v59, 0.0 }
 0x282   :  { %v1838_v3 = vmax.f32 %v3376_v2, 0.0  ;;  %v5198_v32 = vrot.slane %v1912_v23, %v5400_v46 }
 0x283   :  { %v1839_v36 = vmax.f32 %v3378_v60, 0.0 }
 0x284   :  { %v1874_v39 = vpack.c.bf16 %v1838_v3, %v1836_v27 }
 0x285   :  { %v1875_v49 = vpack.c.bf16 %v1839_v36, %v1837_v48  ;;  %v1765_v28 = vpop.f32.mrb[56].mxu0 }
 0x286   :  { %v3380_v7 = vadd.f32 %v1765_v28, %v1187_v61  ;;  %v1767_v11 = vpop.f32.mrb[57].mxu0 }
 0x287   :  { %v3382_v41 = vadd.f32 %v1767_v11, %v1189_v19  ;;  %v1769_v31 = vpop.f32.mrb[58].mxu0  ;;  %2246 = vmatprep.mubr.bf16.mxu1 %v1875_v49 }
 0x288   :  { %v3384_v0 = vadd.f32 %v1769_v31, %v1191_v50  ;;  %v1771_v15 = vpop.f32.mrb[59].mxu0  ;;  %2247 = vmatmul.mubr.bf16.gmra.mrb[116].mxu1 %v1874_v39  ;;  %v1840_v18 = vmax.f32 %v3380_v7, 0.0 }
 0x289   :  { %v3386_v51 = vadd.f32 %v1771_v15, %v1193_v20  ;;  %v1841_v14 = vmax.f32 %v3382_v41, 0.0 }
 0x28a   :  { %v1842_v9 = vmax.f32 %v3384_v0, 0.0 }
 0x28b   :  { %v1843_v10 = vmax.f32 %v3386_v51, 0.0 }
 0x28c   :  { %v1876_v21 = vpack.c.bf16 %v1842_v9, %v1840_v18 }
 0x28d   :  { %v1877_v6 = vpack.c.bf16 %v1843_v10, %v1841_v14  ;;  %v1775_v54 = vpop.f32.mrb[60].mxu0 }
 0x28e   :  { %v3388_v8 = vadd.f32 %v1775_v54, %v1197_v52  ;;  %v1777_v24 = vpop.f32.mrb[61].mxu0 }
 0x28f   :  { %v3390_v55 = vadd.f32 %v1777_v24, %v1199_v53  ;;  %v1779_v16 = vpop.f32.mrb[62].mxu0  ;;  %2256 = vmatprep.mubr.bf16.mxu1 %v1877_v6 }
 0x290   :  { %v3392_v13 = vadd.f32 %v1779_v16, %v1201_v5  ;;  %v1781_v44 = vpop.f32.mrb[63].mxu0  ;;  %2257 = vmatmul.mubr.bf16.gmra.mrb[120].mxu1 %v1876_v21  ;;  %v1844_v1 = vmax.f32 %v3388_v8, 0.0 }
 0x291   :  { %v3394_v56 = vadd.f32 %v1781_v44, %v1203_v34  ;;  %v1845_v29 = vmax.f32 %v3390_v55, 0.0 }
 0x292   :  { %v1846_v25 = vmax.f32 %v3392_v13, 0.0 }
 0x293   :  { %v1847_v57 = vmax.f32 %v3394_v56, 0.0 }
 0x294   :  { %v1878_v45 = vpack.c.bf16 %v1846_v25, %v1844_v1 }
 0x295   :  { %v1879_v35 = vpack.c.bf16 %v1847_v57, %v1845_v29 }
 0x297   :  { %2266 = vmatprep.mubr.bf16.mxu1 %v1879_v35 }
 0x298   :  { %2267 = vmatmul.mubr.bf16.gmra.mrb[124].mxu1 %v1878_v45 }
 0x2f3   :  { %v2118_v26 = vpop.f32.mrb[64].mxu1 }
 0x2f4   :  { %v2119_v37 = vadd.f32 %v2118_v26, %v5194_v17  ;;  %v2120_v38 = vpop.f32.mrb[65].mxu1 }
 0x2f5   :  { %v2121_v59 = vadd.f32 %v2120_v38, %v5198_v32  ;;  %v2122_v22 = vpop.f32.mrb[66].mxu1 }
 0x2f6   :  { %v2123_v2 = vadd.f32 %v2122_v22, %v5194_v17  ;;  %v2124_v47 = vpop.f32.mrb[67].mxu1  ;;  %v2277_v27 = vmax.f32 %v2119_v37, 0.0 }
 0x2f7   :  { %v2125_v60 = vadd.f32 %v2124_v47, %v5198_v32  ;;  %v2278_v4 = vmax.f32 %v2121_v59, 0.0 }
 0x2f8   :  { %v2279_v3 = vmax.f32 %v2123_v2, 0.0 }
 0x2f9   :  { %v2280_v61 = vmax.f32 %v2125_v60, 0.0 }
 0x2fa   :  { %v2341_v48 = vpack.c.bf16 %v2279_v3, %v2277_v27 }
 0x2fb   :  { %v2342_v36 = vpack.c.bf16 %v2280_v61, %v2278_v4  ;;  %v2128_v62 = vpop.f32.mrb[68].mxu1 }
 0x2fc   :  { %v2129_v19 = vadd.f32 %v2128_v62, %v5194_v17  ;;  %v2130_v39 = vpop.f32.mrb[69].mxu1 }
 0x2fd   :  { %v2131_v49 = vadd.f32 %v2130_v39, %v5198_v32  ;;  %v2132_v28 = vpop.f32.mrb[70].mxu1  ;;  %2540 = vmatprep.mubr.bf16.mxu1 %v2342_v36 }
 0x2fe   :  { %v2133_v40 = vadd.f32 %v2132_v28, %v5194_v17  ;;  %v2134_v50 = vpop.f32.mrb[71].mxu1  ;;  %2541 = vmatmul.mubr.bf16.vlgmr.msra.gmra.mrb[128].mxu1 %v2341_v48  ;;  %v2281_v11 = vmax.f32 %v2129_v19, 0.0 }
 0x2ff   :  { %v2135_v7 = vadd.f32 %v2134_v50, %v5198_v32  ;;  %v2282_v20 = vmax.f32 %v2131_v49, 0.0 }
 0x300   :  { %v2283_v63 = vmax.f32 %v2133_v40, 0.0 }
 0x301   :  { %v2284_v41 = vmax.f32 %v2135_v7, 0.0 }
 0x302   :  { %v2343_v31 = vpack.c.bf16 %v2283_v63, %v2281_v11 }
 0x303   :  { %v2344_v0 = vpack.c.bf16 %v2284_v41, %v2282_v20  ;;  %v2138_v15 = vpop.f32.mrb[72].mxu1 }
 0x304   :  { %v2139_v51 = vadd.f32 %v2138_v15, %v5194_v17  ;;  %v2140_v18 = vpop.f32.mrb[73].mxu1 }
 0x305   :  { %v2141_v9 = vadd.f32 %v2140_v18, %v5198_v32  ;;  %v2142_v42 = vpop.f32.mrb[74].mxu1  ;;  %2548 = vmatprep.mubr.bf16.mxu1 %v2344_v0 }
 0x306   :  { %v2143_v52 = vadd.f32 %v2142_v42, %v5194_v17  ;;  %v2144_v14 = vpop.f32.mrb[75].mxu1  ;;  %2549 = vmatmul.mubr.bf16.gmra.mrb[132].mxu1 %v2343_v31  ;;  %v2285_v12 = vmax.f32 %v2139_v51, 0.0 }
 0x307   :  { %v2145_v10 = vadd.f32 %v2144_v14, %v5198_v32  ;;  %v2286_v21 = vmax.f32 %v2141_v9, 0.0 }
 0x308   :  { %v2287_v53 = vmax.f32 %v2143_v52, 0.0 }
 0x309   :  { %v2288_v6 = vmax.f32 %v2145_v10, 0.0 }
 0x30a   :  { %v2345_v54 = vpack.c.bf16 %v2287_v53, %v2285_v12 }
 0x30b   :  { %v2346_v33 = vpack.c.bf16 %v2288_v6, %v2286_v21  ;;  %v2148_v5 = vpop.f32.mrb[76].mxu1 }
 0x30c   :  { %v2149_v8 = vadd.f32 %v2148_v5, %v5194_v17  ;;  %v2150_v24 = vpop.f32.mrb[77].mxu1 }
 0x30d   :  { %v2151_v43 = vadd.f32 %v2150_v24, %v5198_v32  ;;  %v2152_v34 = vpop.f32.mrb[78].mxu1  ;;  %2556 = vmatprep.mubr.bf16.mxu1 %v2346_v33 }
 0x30e   :  { %v2153_v55 = vadd.f32 %v2152_v34, %v5194_v17  ;;  %v2154_v16 = vpop.f32.mrb[79].mxu1  ;;  %2557 = vmatmul.mubr.bf16.gmra.mrb[136].mxu1 %v2345_v54  ;;  %v2289_v44 = vmax.f32 %v2149_v8, 0.0 }
 0x30f   :  { %v2155_v13 = vadd.f32 %v2154_v16, %v5198_v32  ;;  %v2290_v1 = vmax.f32 %v2151_v43, 0.0 }
 0x310   :  { %v2291_v56 = vmax.f32 %v2153_v55, 0.0 }
 0x311   :  { %v2292_v25 = vmax.f32 %v2155_v13, 0.0 }
 0x312   :  { %v2347_v29 = vpack.c.bf16 %v2291_v56, %v2289_v44 }
 0x313   :  { %v2348_v57 = vpack.c.bf16 %v2292_v25, %v2290_v1  ;;  %v2158_v45 = vpop.f32.mrb[80].mxu1 }
 0x314   :  { %v2159_v35 = vadd.f32 %v2158_v45, %v5194_v17  ;;  %v2160_v23 = vpop.f32.mrb[81].mxu1 }
 0x315   :  { %v2161_v30 = vadd.f32 %v2160_v23, %v5198_v32  ;;  %v2162_v58 = vpop.f32.mrb[82].mxu1  ;;  %2564 = vmatprep.mubr.bf16.mxu1 %v2348_v57 }
 0x316   :  { %v2163_v46 = vadd.f32 %v2162_v58, %v5194_v17  ;;  %v2164_v26 = vpop.f32.mrb[83].mxu1  ;;  %2565 = vmatmul.mubr.bf16.gmra.mrb[140].mxu1 %v2347_v29  ;;  %v2293_v38 = vmax.f32 %v2159_v35, 0.0 }
 0x317   :  { %v2165_v37 = vadd.f32 %v2164_v26, %v5198_v32  ;;  %v2294_v22 = vmax.f32 %v2161_v30, 0.0 }
 0x318   :  { %v2295_v59 = vmax.f32 %v2163_v46, 0.0 }
 0x319   :  { %v2296_v2 = vmax.f32 %v2165_v37, 0.0 }
 0x31a   :  { %v2349_v47 = vpack.c.bf16 %v2295_v59, %v2293_v38 }
 0x31b   :  { %v2350_v60 = vpack.c.bf16 %v2296_v2, %v2294_v22  ;;  %v2168_v27 = vpop.f32.mrb[84].mxu1 }
 0x31c   :  { %v2169_v3 = vadd.f32 %v2168_v27, %v5194_v17  ;;  %v2170_v4 = vpop.f32.mrb[85].mxu1 }
 0x31d   :  { %v2171_v61 = vadd.f32 %v2170_v4, %v5198_v32  ;;  %v2172_v48 = vpop.f32.mrb[86].mxu1  ;;  %2572 = vmatprep.mubr.bf16.mxu1 %v2350_v60 }
 0x31e   :  { %v2173_v36 = vadd.f32 %v2172_v48, %v5194_v17  ;;  %v2174_v62 = vpop.f32.mrb[87].mxu1  ;;  %2573 = vmatmul.mubr.bf16.gmra.mrb[144].mxu1 %v2349_v47  ;;  %v2297_v39 = vmax.f32 %v2169_v3, 0.0 }
 0x31f   :  { %v2175_v19 = vadd.f32 %v2174_v62, %v5198_v32  ;;  %v2298_v28 = vmax.f32 %v2171_v61, 0.0 }
 0x320   :  { %v2299_v49 = vmax.f32 %v2173_v36, 0.0 }
 0x321   :  { %v2300_v40 = vmax.f32 %v2175_v19, 0.0 }
 0x322   :  { %v2351_v50 = vpack.c.bf16 %v2299_v49, %v2297_v39 }
 0x323   :  { %v2352_v7 = vpack.c.bf16 %v2300_v40, %v2298_v28  ;;  %v2178_v11 = vpop.f32.mrb[88].mxu1 }
 0x324   :  { %v2179_v63 = vadd.f32 %v2178_v11, %v5194_v17  ;;  %v2180_v20 = vpop.f32.mrb[89].mxu1 }
 0x325   :  { %v2181_v41 = vadd.f32 %v2180_v20, %v5198_v32  ;;  %v2182_v31 = vpop.f32.mrb[90].mxu1  ;;  %2580 = vmatprep.mubr.bf16.mxu1 %v2352_v7 }
 0x326   :  { %v2183_v0 = vadd.f32 %v2182_v31, %v5194_v17  ;;  %v2184_v15 = vpop.f32.mrb[91].mxu1  ;;  %2581 = vmatmul.mubr.bf16.gmra.mrb[148].mxu1 %v2351_v50  ;;  %v2301_v18 = vmax.f32 %v2179_v63, 0.0 }
 0x327   :  { %v2185_v51 = vadd.f32 %v2184_v15, %v5198_v32  ;;  %v2302_v42 = vmax.f32 %v2181_v41, 0.0 }
 0x328   :  { %v2303_v9 = vmax.f32 %v2183_v0, 0.0 }
 0x329   :  { %v2304_v52 = vmax.f32 %v2185_v51, 0.0 }
 0x32a   :  { %v2353_v14 = vpack.c.bf16 %v2303_v9, %v2301_v18 }
 0x32b   :  { %v2354_v10 = vpack.c.bf16 %v2304_v52, %v2302_v42  ;;  %v2188_v12 = vpop.f32.mrb[92].mxu1 }
 0x32c   :  { %v2189_v53 = vadd.f32 %v2188_v12, %v5194_v17  ;;  %v2190_v21 = vpop.f32.mrb[93].mxu1 }
 0x32d   :  { %v2191_v6 = vadd.f32 %v2190_v21, %v5198_v32  ;;  %v2192_v54 = vpop.f32.mrb[94].mxu1  ;;  %2588 = vmatprep.mubr.bf16.mxu1 %v2354_v10 }
 0x32e   :  { %v2193_v33 = vadd.f32 %v2192_v54, %v5194_v17  ;;  %v2194_v5 = vpop.f32.mrb[95].mxu1  ;;  %2589 = vmatmul.mubr.bf16.gmra.mrb[152].mxu1 %v2353_v14  ;;  %v2305_v24 = vmax.f32 %v2189_v53, 0.0 }
 0x32f   :  { %v2195_v8 = vadd.f32 %v2194_v5, %v5198_v32  ;;  %v2306_v34 = vmax.f32 %v2191_v6, 0.0 }
 0x330   :  { %v2307_v43 = vmax.f32 %v2193_v33, 0.0 }
 0x331   :  { %v2308_v55 = vmax.f32 %v2195_v8, 0.0 }
 0x332   :  { %v2355_v16 = vpack.c.bf16 %v2307_v43, %v2305_v24 }
 0x333   :  { %v2356_v13 = vpack.c.bf16 %v2308_v55, %v2306_v34  ;;  %v2198_v44 = vpop.f32.mrb[96].mxu1 }
 0x334   :  { %v2199_v56 = vadd.f32 %v2198_v44, %v5194_v17  ;;  %v2200_v1 = vpop.f32.mrb[97].mxu1 }
 0x335   :  { %v2201_v25 = vadd.f32 %v2200_v1, %v5198_v32  ;;  %v2202_v29 = vpop.f32.mrb[98].mxu1  ;;  %2596 = vmatprep.mubr.bf16.mxu1 %v2356_v13 }
 0x336   :  { %v2203_v57 = vadd.f32 %v2202_v29, %v5194_v17  ;;  %v2204_v45 = vpop.f32.mrb[99].mxu1  ;;  %2597 = vmatmul.mubr.bf16.gmra.mrb[156].mxu1 %v2355_v16  ;;  %v2309_v23 = vmax.f32 %v2199_v56, 0.0 }
 0x337   :  { %v2205_v35 = vadd.f32 %v2204_v45, %v5198_v32  ;;  %v2310_v58 = vmax.f32 %v2201_v25, 0.0 }
 0x338   :  { %v2311_v30 = vmax.f32 %v2203_v57, 0.0 }
 0x339   :  { %v2312_v46 = vmax.f32 %v2205_v35, 0.0 }
 0x33a   :  { %v2357_v26 = vpack.c.bf16 %v2311_v30, %v2309_v23 }
 0x33b   :  { %v2358_v37 = vpack.c.bf16 %v2312_v46, %v2310_v58  ;;  %v2208_v38 = vpop.f32.mrb[100].mxu1 }
 0x33c   :  { %v2209_v59 = vadd.f32 %v2208_v38, %v5194_v17  ;;  %v2210_v22 = vpop.f32.mrb[101].mxu1 }
 0x33d   :  { %v2211_v2 = vadd.f32 %v2210_v22, %v5198_v32  ;;  %v2212_v47 = vpop.f32.mrb[102].mxu1  ;;  %2604 = vmatprep.mubr.bf16.mxu1 %v2358_v37 }
 0x33e   :  { %v2213_v60 = vadd.f32 %v2212_v47, %v5194_v17  ;;  %v2214_v27 = vpop.f32.mrb[103].mxu1  ;;  %2605 = vmatmul.mubr.bf16.gmra.mrb[160].mxu1 %v2357_v26  ;;  %v2313_v4 = vmax.f32 %v2209_v59, 0.0 }
 0x33f   :  { %v2215_v3 = vadd.f32 %v2214_v27, %v5198_v32  ;;  %v2314_v48 = vmax.f32 %v2211_v2, 0.0 }
 0x340   :  { %v2315_v61 = vmax.f32 %v2213_v60, 0.0 }
 0x341   :  { %v2316_v36 = vmax.f32 %v2215_v3, 0.0 }
 0x342   :  { %v2359_v62 = vpack.c.bf16 %v2315_v61, %v2313_v4 }
 0x343   :  { %v2360_v19 = vpack.c.bf16 %v2316_v36, %v2314_v48  ;;  %v2218_v39 = vpop.f32.mrb[104].mxu1 }
 0x344   :  { %v2219_v49 = vadd.f32 %v2218_v39, %v5194_v17  ;;  %v2220_v28 = vpop.f32.mrb[105].mxu1 }
 0x345   :  { %v2221_v40 = vadd.f32 %v2220_v28, %v5198_v32  ;;  %v2222_v50 = vpop.f32.mrb[106].mxu1  ;;  %2612 = vmatprep.mubr.bf16.mxu1 %v2360_v19 }
 0x346   :  { %v2223_v7 = vadd.f32 %v2222_v50, %v5194_v17  ;;  %v2224_v11 = vpop.f32.mrb[107].mxu1  ;;  %2613 = vmatmul.mubr.bf16.gmra.mrb[164].mxu1 %v2359_v62  ;;  %v2317_v20 = vmax.f32 %v2219_v49, 0.0 }
 0x347   :  { %v2225_v63 = vadd.f32 %v2224_v11, %v5198_v32  ;;  %v2318_v31 = vmax.f32 %v2221_v40, 0.0 }
 0x348   :  { %v2319_v41 = vmax.f32 %v2223_v7, 0.0 }
 0x349   :  { %v2320_v0 = vmax.f32 %v2225_v63, 0.0 }
 0x34a   :  { %v2361_v15 = vpack.c.bf16 %v2319_v41, %v2317_v20 }
 0x34b   :  { %v2362_v51 = vpack.c.bf16 %v2320_v0, %v2318_v31  ;;  %v2228_v18 = vpop.f32.mrb[108].mxu1 }
 0x34c   :  { %v2229_v9 = vadd.f32 %v2228_v18, %v5194_v17  ;;  %v2230_v42 = vpop.f32.mrb[109].mxu1 }
 0x34d   :  { %v2231_v52 = vadd.f32 %v2230_v42, %v5198_v32  ;;  %v2232_v14 = vpop.f32.mrb[110].mxu1  ;;  %2620 = vmatprep.mubr.bf16.mxu1 %v2362_v51 }
 0x34e   :  { %v2233_v10 = vadd.f32 %v2232_v14, %v5194_v17  ;;  %v2234_v12 = vpop.f32.mrb[111].mxu1  ;;  %2621 = vmatmul.mubr.bf16.gmra.mrb[168].mxu1 %v2361_v15  ;;  %v2321_v21 = vmax.f32 %v2229_v9, 0.0 }
 0x34f   :  { %v2235_v53 = vadd.f32 %v2234_v12, %v5198_v32  ;;  %v2322_v54 = vmax.f32 %v2231_v52, 0.0 }
 0x350   :  { %v2323_v6 = vmax.f32 %v2233_v10, 0.0 }
 0x351   :  { %v2324_v33 = vmax.f32 %v2235_v53, 0.0 }
 0x352   :  { %v2363_v5 = vpack.c.bf16 %v2323_v6, %v2321_v21 }
 0x353   :  { %v2364_v8 = vpack.c.bf16 %v2324_v33, %v2322_v54  ;;  %v2238_v24 = vpop.f32.mrb[112].mxu1 }
 0x354   :  { %v2239_v43 = vadd.f32 %v2238_v24, %v5194_v17  ;;  %v2240_v34 = vpop.f32.mrb[113].mxu1 }
 0x355   :  { %v2241_v55 = vadd.f32 %v2240_v34, %v5198_v32  ;;  %v2242_v16 = vpop.f32.mrb[114].mxu1  ;;  %2628 = vmatprep.mubr.bf16.mxu1 %v2364_v8 }
 0x356   :  { %v2243_v13 = vadd.f32 %v2242_v16, %v5194_v17  ;;  %v2244_v44 = vpop.f32.mrb[115].mxu1  ;;  %2629 = vmatmul.mubr.bf16.gmra.mrb[172].mxu1 %v2363_v5  ;;  %v2325_v1 = vmax.f32 %v2239_v43, 0.0 }
 0x357   :  { %v2245_v56 = vadd.f32 %v2244_v44, %v5198_v32  ;;  %v2326_v29 = vmax.f32 %v2241_v55, 0.0 }
 0x358   :  { %v2327_v25 = vmax.f32 %v2243_v13, 0.0 }
 0x359   :  { %v2328_v57 = vmax.f32 %v2245_v56, 0.0 }
 0x35a   :  { %v2365_v45 = vpack.c.bf16 %v2327_v25, %v2325_v1 }
 0x35b   :  { %v2366_v35 = vpack.c.bf16 %v2328_v57, %v2326_v29  ;;  %v2248_v23 = vpop.f32.mrb[116].mxu1 }
 0x35c   :  { %v2249_v30 = vadd.f32 %v2248_v23, %v5194_v17  ;;  %v2250_v58 = vpop.f32.mrb[117].mxu1 }
 0x35d   :  { %v2251_v46 = vadd.f32 %v2250_v58, %v5198_v32  ;;  %v2252_v26 = vpop.f32.mrb[118].mxu1  ;;  %2636 = vmatprep.mubr.bf16.mxu1 %v2366_v35 }
 0x35e   :  { %v2253_v37 = vadd.f32 %v2252_v26, %v5194_v17  ;;  %v2254_v38 = vpop.f32.mrb[119].mxu1  ;;  %2637 = vmatmul.mubr.bf16.gmra.mrb[176].mxu1 %v2365_v45  ;;  %v2329_v22 = vmax.f32 %v2249_v30, 0.0 }
 0x35f   :  { %v2255_v59 = vadd.f32 %v2254_v38, %v5198_v32  ;;  %v2330_v47 = vmax.f32 %v2251_v46, 0.0 }
 0x360   :  { %v2331_v2 = vmax.f32 %v2253_v37, 0.0 }
 0x361   :  { %v2332_v60 = vmax.f32 %v2255_v59, 0.0 }
 0x362   :  { %v2367_v27 = vpack.c.bf16 %v2331_v2, %v2329_v22 }
 0x363   :  { %v2368_v3 = vpack.c.bf16 %v2332_v60, %v2330_v47  ;;  %v2258_v4 = vpop.f32.mrb[120].mxu1 }
 0x364   :  { %v2259_v61 = vadd.f32 %v2258_v4, %v5194_v17  ;;  %v2260_v48 = vpop.f32.mrb[121].mxu1 }
 0x365   :  { %v2261_v36 = vadd.f32 %v2260_v48, %v5198_v32  ;;  %v2262_v62 = vpop.f32.mrb[122].mxu1  ;;  %2644 = vmatprep.mubr.bf16.mxu1 %v2368_v3 }
 0x366   :  { %v2263_v19 = vadd.f32 %v2262_v62, %v5194_v17  ;;  %v2264_v39 = vpop.f32.mrb[123].mxu1  ;;  %2645 = vmatmul.mubr.bf16.gmra.mrb[180].mxu1 %v2367_v27  ;;  %v2333_v28 = vmax.f32 %v2259_v61, 0.0 }
 0x367   :  { %v2265_v49 = vadd.f32 %v2264_v39, %v5198_v32  ;;  %v2334_v50 = vmax.f32 %v2261_v36, 0.0 }
 0x368   :  { %v2335_v40 = vmax.f32 %v2263_v19, 0.0 }
 0x369   :  { %v2336_v7 = vmax.f32 %v2265_v49, 0.0 }
 0x36a   :  { %v2369_v11 = vpack.c.bf16 %v2335_v40, %v2333_v28 }
 0x36b   :  { %v2370_v63 = vpack.c.bf16 %v2336_v7, %v2334_v50  ;;  %v2268_v20 = vpop.f32.mrb[124].mxu1 }
 0x36c   :  { %v2269_v41 = vadd.f32 %v2268_v20, %v5194_v17  ;;  %v2270_v31 = vpop.f32.mrb[125].mxu1 }
 0x36d   :  { %v2271_v0 = vadd.f32 %v2270_v31, %v5198_v32  ;;  %v2272_v15 = vpop.f32.mrb[126].mxu1  ;;  %2652 = vmatprep.mubr.bf16.mxu1 %v2370_v63 }
 0x36e   :  { %v2273_v51 = vadd.f32 %v2272_v15, %v5194_v17  ;;  %v2274_v18 = vpop.f32.mrb[127].mxu1  ;;  %2653 = vmatmul.mubr.bf16.gmra.mrb[184].mxu1 %v2369_v11  ;;  %v2337_v42 = vmax.f32 %v2269_v41, 0.0  ;;  %v5267_v17 = vld [vmem:[%s5355_s6] ss:$0 sm:$0xff] }
 0x36f   :  { %v2275_v9 = vadd.f32 %v2274_v18, %v5198_v32  ;;  %v2338_v14 = vmax.f32 %v2271_v0, 0.0 }
 0x370   :  { %v2339_v52 = vmax.f32 %v2273_v51, 0.0 }
 0x371   :  { %v2340_v10 = vmax.f32 %v2275_v9, 0.0 }
 0x372   :  { %v2371_v12 = vpack.c.bf16 %v2339_v52, %v2337_v42 }
 0x373   :  { %v2372_v53 = vpack.c.bf16 %v2340_v10, %v2338_v14 }
 0x375   :  { %2660 = vmatprep.mubr.bf16.mxu1 %v2372_v53 }
 0x376   :  { %2661 = vmatmul.mubr.bf16.gmra.mrb[188].mxu1 %v2371_v12 }
 0x3d1   :  { %v3171_v21 = vpop.f32.mrb[128].mxu1 }
 0x3d2   :  { %v3172_v6 = vpop.f32.mrb[129].mxu1 }
 0x3d3   :  { %v3173_v54 = vadd.f32 %v3172_v6, %v3171_v21  ;;  %v3174_v33 = vpop.f32.mrb[130].mxu1 }
 0x3d4   :  { %v3175_v5 = vpop.f32.mrb[131].mxu1 }
 0x3d5   :  { %v3176_v8 = vadd.f32 %v3175_v5, %v3174_v33  ;;  %v2543_v32 = vadd.f32 %v3173_v54, %v5267_v17 }
 0x3d7   :  { %v2546_v24 = vadd.f32 %v3176_v8, %v5267_v17 }
 0x3d9   :  { %v3063_v43 = vpack.c.bf16 %v2546_v24, %v2543_v32  ;;  %v3177_v34 = vpop.f32.mrb[132].mxu1 }
 0x3da   :  { %v3178_v55 = vpop.f32.mrb[133].mxu1 }
 0x3db   :  { %3064 = vst [vmem:[%s5356_s7] sm:$0xff] %v3063_v43   ;;  %v3179_v16 = vadd.f32 %v3178_v55, %v3177_v34  ;;  %v3180_v13 = vpop.f32.mrb[134].mxu1 }
 0x3dc   :  { %v3181_v44 = vpop.f32.mrb[135].mxu1 }
 0x3dd   :  { %v3182_v56 = vadd.f32 %v3181_v44, %v3180_v13  ;;  %v2551_v1 = vadd.f32 %v3179_v16, %v5267_v17 }
 0x3df   :  { %v2554_v25 = vadd.f32 %v3182_v56, %v5267_v17 }
 0x3e1   :  { %v3068_v29 = vpack.c.bf16 %v2554_v25, %v2551_v1  ;;  %v3183_v57 = vpop.f32.mrb[136].mxu1 }
 0x3e2   :  { %v3184_v45 = vpop.f32.mrb[137].mxu1 }
 0x3e3   :  { %3140 = vst [vmem:[%s5356_s7 + $0x8] sm:$0xff] %v3068_v29   ;;  %v3185_v35 = vadd.f32 %v3184_v45, %v3183_v57  ;;  %v3186_v23 = vpop.f32.mrb[138].mxu1 }
 0x3e4   :  { %v3187_v30 = vpop.f32.mrb[139].mxu1 }
 0x3e5   :  { %v3188_v58 = vadd.f32 %v3187_v30, %v3186_v23  ;;  %v2559_v46 = vadd.f32 %v3185_v35, %v5267_v17 }
 0x3e7   :  { %v2562_v26 = vadd.f32 %v3188_v58, %v5267_v17 }
 0x3e9   :  { %v3073_v37 = vpack.c.bf16 %v2562_v26, %v2559_v46  ;;  %v3189_v38 = vpop.f32.mrb[140].mxu1 }
 0x3ea   :  { %v3190_v59 = vpop.f32.mrb[141].mxu1 }
 0x3eb   :  { %3141 = vst [vmem:[%s5356_s7 + $0x10] sm:$0xff] %v3073_v37   ;;  %v3191_v22 = vadd.f32 %v3190_v59, %v3189_v38  ;;  %v3192_v2 = vpop.f32.mrb[142].mxu1 }
 0x3ec   :  { %v3193_v47 = vpop.f32.mrb[143].mxu1 }
 0x3ed   :  { %v3194_v60 = vadd.f32 %v3193_v47, %v3192_v2  ;;  %v2567_v27 = vadd.f32 %v3191_v22, %v5267_v17 }
 0x3ef   :  { %v2570_v3 = vadd.f32 %v3194_v60, %v5267_v17 }
 0x3f1   :  { %v3078_v4 = vpack.c.bf16 %v2570_v3, %v2567_v27  ;;  %v3195_v61 = vpop.f32.mrb[144].mxu1 }
 0x3f2   :  { %v3196_v48 = vpop.f32.mrb[145].mxu1 }
 0x3f3   :  { %3142 = vst [vmem:[%s5356_s7 + $0x18] sm:$0xff] %v3078_v4   ;;  %v3197_v36 = vadd.f32 %v3196_v48, %v3195_v61  ;;  %v3198_v62 = vpop.f32.mrb[146].mxu1 }
 0x3f4   :  { %v3199_v19 = vpop.f32.mrb[147].mxu1 }
 0x3f5   :  { %v3200_v39 = vadd.f32 %v3199_v19, %v3198_v62  ;;  %v2575_v49 = vadd.f32 %v3197_v36, %v5267_v17 }
 0x3f7   :  { %v2578_v28 = vadd.f32 %v3200_v39, %v5267_v17 }
 0x3f9   :  { %v3083_v40 = vpack.c.bf16 %v2578_v28, %v2575_v49  ;;  %v3201_v50 = vpop.f32.mrb[148].mxu1 }
 0x3fa   :  { %v3202_v7 = vpop.f32.mrb[149].mxu1 }
 0x3fb   :  { %3143 = vst [vmem:[%s5356_s7 + $0x20] sm:$0xff] %v3083_v40   ;;  %v3203_v11 = vadd.f32 %v3202_v7, %v3201_v50  ;;  %v3204_v63 = vpop.f32.mrb[150].mxu1 }
 0x3fc   :  { %v3205_v20 = vpop.f32.mrb[151].mxu1 }
 0x3fd   :  { %v3206_v41 = vadd.f32 %v3205_v20, %v3204_v63  ;;  %v2583_v31 = vadd.f32 %v3203_v11, %v5267_v17 }
 0x3ff   :  { %v2586_v0 = vadd.f32 %v3206_v41, %v5267_v17 }
 0x401   :  { %v3088_v15 = vpack.c.bf16 %v2586_v0, %v2583_v31  ;;  %v3207_v51 = vpop.f32.mrb[152].mxu1 }
 0x402   :  { %v3208_v18 = vpop.f32.mrb[153].mxu1 }
 0x403   :  { %3144 = vst [vmem:[%s5356_s7 + $0x28] sm:$0xff] %v3088_v15   ;;  %v3209_v9 = vadd.f32 %v3208_v18, %v3207_v51  ;;  %v3210_v42 = vpop.f32.mrb[154].mxu1 }
 0x404   :  { %v3211_v52 = vpop.f32.mrb[155].mxu1 }
 0x405   :  { %v3212_v14 = vadd.f32 %v3211_v52, %v3210_v42  ;;  %v2591_v10 = vadd.f32 %v3209_v9, %v5267_v17 }
 0x407   :  { %v2594_v12 = vadd.f32 %v3212_v14, %v5267_v17 }
 0x409   :  { %v3093_v53 = vpack.c.bf16 %v2594_v12, %v2591_v10  ;;  %v3213_v21 = vpop.f32.mrb[156].mxu1 }
 0x40a   :  { %v3214_v6 = vpop.f32.mrb[157].mxu1 }
 0x40b   :  { %3145 = vst [vmem:[%s5356_s7 + $0x30] sm:$0xff] %v3093_v53   ;;  %v3215_v54 = vadd.f32 %v3214_v6, %v3213_v21  ;;  %v3216_v33 = vpop.f32.mrb[158].mxu1 }
 0x40c   :  { %v3217_v5 = vpop.f32.mrb[159].mxu1 }
 0x40d   :  { %v3218_v8 = vadd.f32 %v3217_v5, %v3216_v33  ;;  %v2599_v32 = vadd.f32 %v3215_v54, %v5267_v17 }
 0x40f   :  { %v2602_v24 = vadd.f32 %v3218_v8, %v5267_v17 }
 0x411   :  { %v3098_v43 = vpack.c.bf16 %v2602_v24, %v2599_v32  ;;  %v3219_v34 = vpop.f32.mrb[160].mxu1 }
 0x412   :  { %v3220_v55 = vpop.f32.mrb[161].mxu1 }
 0x413   :  { %3146 = vst [vmem:[%s5356_s7 + $0x38] sm:$0xff] %v3098_v43   ;;  %v3221_v16 = vadd.f32 %v3220_v55, %v3219_v34  ;;  %v3222_v13 = vpop.f32.mrb[162].mxu1 }
 0x414   :  { %v3223_v44 = vpop.f32.mrb[163].mxu1 }
 0x415   :  { %v3224_v56 = vadd.f32 %v3223_v44, %v3222_v13  ;;  %v2607_v1 = vadd.f32 %v3221_v16, %v5267_v17 }
 0x417   :  { %v2610_v25 = vadd.f32 %v3224_v56, %v5267_v17 }
 0x419   :  { %v3103_v29 = vpack.c.bf16 %v2610_v25, %v2607_v1  ;;  %v3225_v57 = vpop.f32.mrb[164].mxu1 }
 0x41a   :  { %v3226_v45 = vpop.f32.mrb[165].mxu1 }
 0x41b   :  { %3147 = vst [vmem:[%s5356_s7 + $0x40] sm:$0xff] %v3103_v29   ;;  %v3227_v35 = vadd.f32 %v3226_v45, %v3225_v57  ;;  %v3228_v23 = vpop.f32.mrb[166].mxu1 }
 0x41c   :  { %v3229_v30 = vpop.f32.mrb[167].mxu1 }
 0x41d   :  { %v3230_v58 = vadd.f32 %v3229_v30, %v3228_v23  ;;  %v2615_v46 = vadd.f32 %v3227_v35, %v5267_v17 }
 0x41f   :  { %v2618_v26 = vadd.f32 %v3230_v58, %v5267_v17 }
 0x421   :  { %v3108_v37 = vpack.c.bf16 %v2618_v26, %v2615_v46  ;;  %v3231_v38 = vpop.f32.mrb[168].mxu1 }
 0x422   :  { %v3232_v59 = vpop.f32.mrb[169].mxu1 }
 0x423   :  { %3148 = vst [vmem:[%s5356_s7 + $0x48] sm:$0xff] %v3108_v37   ;;  %v3233_v22 = vadd.f32 %v3232_v59, %v3231_v38  ;;  %v3234_v2 = vpop.f32.mrb[170].mxu1 }
 0x424   :  { %v3235_v47 = vpop.f32.mrb[171].mxu1 }
 0x425   :  { %v3236_v60 = vadd.f32 %v3235_v47, %v3234_v2  ;;  %v2623_v27 = vadd.f32 %v3233_v22, %v5267_v17 }
 0x427   :  { %v2626_v3 = vadd.f32 %v3236_v60, %v5267_v17 }
 0x429   :  { %v3113_v4 = vpack.c.bf16 %v2626_v3, %v2623_v27  ;;  %v3237_v61 = vpop.f32.mrb[172].mxu1 }
 0x42a   :  { %v3238_v48 = vpop.f32.mrb[173].mxu1 }
 0x42b   :  { %3149 = vst [vmem:[%s5356_s7 + $0x50] sm:$0xff] %v3113_v4   ;;  %v3239_v36 = vadd.f32 %v3238_v48, %v3237_v61  ;;  %v3240_v62 = vpop.f32.mrb[174].mxu1 }
 0x42c   :  { %v3241_v19 = vpop.f32.mrb[175].mxu1 }
 0x42d   :  { %v3242_v39 = vadd.f32 %v3241_v19, %v3240_v62  ;;  %v2631_v49 = vadd.f32 %v3239_v36, %v5267_v17 }
 0x42f   :  { %v2634_v28 = vadd.f32 %v3242_v39, %v5267_v17 }
 0x431   :  { %v3118_v40 = vpack.c.bf16 %v2634_v28, %v2631_v49  ;;  %v3243_v50 = vpop.f32.mrb[176].mxu1 }
 0x432   :  { %v3244_v7 = vpop.f32.mrb[177].mxu1 }
 0x433   :  { %3150 = vst [vmem:[%s5356_s7 + $0x58] sm:$0xff] %v3118_v40   ;;  %v3245_v11 = vadd.f32 %v3244_v7, %v3243_v50  ;;  %v3246_v63 = vpop.f32.mrb[178].mxu1 }
 0x434   :  { %v3247_v20 = vpop.f32.mrb[179].mxu1 }
 0x435   :  { %v3248_v41 = vadd.f32 %v3247_v20, %v3246_v63  ;;  %v2639_v31 = vadd.f32 %v3245_v11, %v5267_v17 }
 0x437   :  { %v2642_v0 = vadd.f32 %v3248_v41, %v5267_v17 }
 0x439   :  { %v3123_v15 = vpack.c.bf16 %v2642_v0, %v2639_v31  ;;  %v3249_v51 = vpop.f32.mrb[180].mxu1 }
 0x43a   :  { %v3250_v18 = vpop.f32.mrb[181].mxu1 }
 0x43b   :  { %3151 = vst [vmem:[%s5356_s7 + $0x60] sm:$0xff] %v3123_v15   ;;  %v3251_v9 = vadd.f32 %v3250_v18, %v3249_v51  ;;  %v3252_v42 = vpop.f32.mrb[182].mxu1 }
 0x43c   :  { %v3253_v52 = vpop.f32.mrb[183].mxu1 }
 0x43d   :  { %v3254_v14 = vadd.f32 %v3253_v52, %v3252_v42  ;;  %v2647_v10 = vadd.f32 %v3251_v9, %v5267_v17 }
 0x43f   :  { %v2650_v12 = vadd.f32 %v3254_v14, %v5267_v17 }
 0x441   :  { %v3128_v53 = vpack.c.bf16 %v2650_v12, %v2647_v10  ;;  %v3255_v21 = vpop.f32.mrb[184].mxu1 }
 0x442   :  { %v3256_v6 = vpop.f32.mrb[185].mxu1 }
 0x443   :  { %3152 = vst [vmem:[%s5356_s7 + $0x68] sm:$0xff] %v3128_v53   ;;  %v3257_v54 = vadd.f32 %v3256_v6, %v3255_v21  ;;  %v3258_v33 = vpop.f32.mrb[186].mxu1 }
 0x444   :  { %v3259_v5 = vpop.f32.mrb[187].mxu1 }
 0x445   :  { %v3260_v8 = vadd.f32 %v3259_v5, %v3258_v33  ;;  %v2655_v32 = vadd.f32 %v3257_v54, %v5267_v17 }
 0x447   :  { %v2658_v24 = vadd.f32 %v3260_v8, %v5267_v17 }
 0x449   :  { %v3133_v43 = vpack.c.bf16 %v2658_v24, %v2655_v32  ;;  %v3261_v34 = vpop.f32.mrb[188].mxu1 }
 0x44a   :  { %v3262_v55 = vpop.f32.mrb[189].mxu1 }
 0x44b   :  { %3153 = vst [vmem:[%s5356_s7 + $0x70] sm:$0xff] %v3133_v43   ;;  %v3263_v16 = vadd.f32 %v3262_v55, %v3261_v34  ;;  %v3264_v13 = vpop.f32.mrb[190].mxu1 }
 0x44c   :  { %v3265_v44 = vpop.f32.mrb[191].mxu1 }
 0x44d   :  { %v3266_v56 = vadd.f32 %v3265_v44, %v3264_v13  ;;  %v2663_v1 = vadd.f32 %v3263_v16, %v5267_v17 }
 0x44f   :  { %v2666_v25 = vadd.f32 %v3266_v56, %v5267_v17 }
 0x451   :  { %v3138_v29 = vpack.c.bf16 %v2666_v25, %v2663_v1 }
 0x453   :  { %3154 = vst [vmem:[%s5356_s7 + $0x78] sm:$0xff] %v3138_v29  }

</bundles_post_ra>
